<compile_context>
chip_gen: v5e
topology: v5e:2x2
jax: 0.10.0
libtpu: 0.0.40
codegen_flags: <defaults>
</compile_context>

<pallas_src>
import jax
import jax.numpy as jnp
from jax.experimental import pallas as pl
from jax.experimental.pallas import tpu as pltpu

FEATURE_DIM = 512            # resnet18/34 backbone -> feature_dim = 512
INITIAL_VALUE = 15.0         # final-layer bias init from __init__
BN_EPS = 1e-5
OUT_PAD = 128                # lane-dense padding for the (64, 1) final layer


def _regressor_kernel(x_ref,
                      w1_ref, b1_ref,
                      w2_ref, b2_ref,
                      w3_ref, b3_ref,
                      w4_ref, b4_ref,
                      out_ref):
    # x_ref: (TILE_N, HW, C) channels-last feature tile (f32).
    # Global average pool: the 1/HW factor is folded into w1 -> plain sum.
    pooled = jnp.sum(x_ref[...], axis=1)                      # (TILE_N, C)

    # Linear(512,256) [+ BN folded] + ReLU   (Dropout: identity in eval)
    h = jnp.dot(pooled, w1_ref[...], preferred_element_type=jnp.float32) + b1_ref[...]
    h = jnp.maximum(h, 0.0)

    # Linear(256,128) [+ BN folded] + ReLU
    h = jnp.dot(h, w2_ref[...], preferred_element_type=jnp.float32) + b2_ref[...]
    h = jnp.maximum(h, 0.0)

    # Linear(128,64) [+ BN folded] + ReLU
    h = jnp.dot(h, w3_ref[...], preferred_element_type=jnp.float32) + b3_ref[...]
    h = jnp.maximum(h, 0.0)

    # Linear(64,1) zero-padded to 128 output lanes (lane-dense store).
    out_ref[...] = jnp.dot(h, w4_ref[...], preferred_element_type=jnp.float32) + b4_ref[...]


def _fold_params(params, hw):
    """One-time host transform: fold eval-mode BN (scale, shift) and the
    1/HW pooling factor into the frozen Linear weights/biases; pad the final
    1-wide layer to OUT_PAD lanes."""
    p = {}
    p["w1"] = (params["w1"] * params["s1"][None, :]) / float(hw)
    p["b1"] = (params["b1"] * params["s1"] + params["t1"])[None, :]
    p["w2"] = params["w2"] * params["s2"][None, :]
    p["b2"] = (params["b2"] * params["s2"] + params["t2"])[None, :]
    p["w3"] = params["w3"] * params["s3"][None, :]
    p["b3"] = (params["b3"] * params["s3"] + params["t3"])[None, :]
    w4 = params["w4"]                                   # (64, 1)
    b4 = params["b4"]                                   # (1,)
    p["w4"] = jnp.pad(w4, ((0, 0), (0, OUT_PAD - w4.shape[1])))
    p["b4"] = jnp.pad(b4, (0, OUT_PAD - b4.shape[0]))[None, :]
    return p


def frozen_cnn_regressor_head(features_nchw, params, *, tile_n=128):
    """features_nchw: (N, C, H, W) frozen-backbone feature maps; returns (N,)."""
    N, C, H, W = features_nchw.shape
    HW = H * W

    # Channels-last: (N, HW, C) so C sits on the 128-lane axis.
    x = jnp.transpose(features_nchw.reshape(N, C, HW), (0, 2, 1)).astype(jnp.float32)

    p = _fold_params(params, HW)

    # Tile the batch axis (>= 8 sublanes, <= tile_n); pad N up to a multiple.
    tn = max(8, min(tile_n, ((N + 7) // 8) * 8))
    n_pad = ((N + tn - 1) // tn) * tn
    if n_pad != N:
        x = jnp.pad(x, ((0, n_pad - N), (0, 0), (0, 0)))
    grid = (n_pad // tn,)

    def resident(arr):
        # Weights/biases: full-array block, same tile at every grid step.
        nd = arr.ndim
        return pl.BlockSpec(arr.shape, lambda i, _nd=nd: (0,) * _nd)

    in_specs = [
        pl.BlockSpec((tn, HW, C), lambda i: (i, 0, 0)),   # streamed feature tile
        resident(p["w1"]), resident(p["b1"]),
        resident(p["w2"]), resident(p["b2"]),
        resident(p["w3"]), resident(p["b3"]),
        resident(p["w4"]), resident(p["b4"]),
    ]
    out_spec = pl.BlockSpec((tn, OUT_PAD), lambda i: (i, 0))

    out = pl.pallas_call(
        _regressor_kernel,
        out_shape=jax.ShapeDtypeStruct((n_pad, OUT_PAD), jnp.float32),
        grid=grid,
        in_specs=in_specs,
        out_specs=out_spec,
        compiler_params=pltpu.CompilerParams(
            dimension_semantics=("parallel",),            # megacore-shard N on v7x
            vmem_limit_bytes=48 * 1024 * 1024,            # fits v5e/v6e/v7x
        ),
    )(x, p["w1"], p["b1"], p["w2"], p["b2"], p["w3"], p["b3"], p["w4"], p["b4"])

    return out[:N, 0]                                     # .squeeze()


def make_params(key):
    """Deterministic synthetic parameters matching the regressor's shapes."""
    dims = [(FEATURE_DIM, 256), (256, 128), (128, 64), (64, 1)]
    keys = jax.random.split(key, 16)
    params = {}
    ki = 0
    for li, (din, dout) in enumerate(dims, start=1):
        w = 0.05 * jax.random.normal(keys[ki], (din, dout), jnp.float32); ki += 1
        b = 0.01 * jax.random.normal(keys[ki], (dout,), jnp.float32); ki += 1
        if li == 4:
            b = jnp.full((1,), INITIAL_VALUE, jnp.float32)   # nn.init.constant_(bias, 15.0)
        params[f"w{li}"] = w
        params[f"b{li}"] = b
        if li < 4:
            # BatchNorm1d(dout), eval mode: fold (gamma, beta, mean, var) -> (scale, shift)
            gamma = 1.0 + 0.1 * jax.random.normal(keys[ki], (dout,), jnp.float32); ki += 1
            beta = 0.05 * jax.random.normal(keys[ki], (dout,), jnp.float32); ki += 1
            rmean = 0.1 * jnp.sin(jnp.arange(dout, dtype=jnp.float32))
            rvar = 1.0 + 0.1 * jnp.cos(jnp.arange(dout, dtype=jnp.float32)) ** 2
            scale = gamma * jax.lax.rsqrt(rvar + BN_EPS)
            shift = beta - rmean * scale
            params[f"s{li}"] = scale
            params[f"t{li}"] = shift
    return params


def _reference(features_nchw, p):
    """Pure-JAX reference of the same forward pass (for validation)."""
    pooled = jnp.mean(features_nchw.astype(jnp.float32), axis=(2, 3))
    h = jnp.maximum((pooled @ p["w1"] + p["b1"]) * p["s1"] + p["t1"], 0.0)
    h = jnp.maximum((h @ p["w2"] + p["b2"]) * p["s2"] + p["t2"], 0.0)
    h = jnp.maximum((h @ p["w3"] + p["b3"]) * p["s3"] + p["t3"], 0.0)
    return (h @ p["w4"] + p["b4"])[:, 0]


if __name__ == "__main__":
    key = jax.random.PRNGKey(0)
    k_x, k_p = jax.random.split(key)

    # Small deterministic "frozen backbone output": N=4, C=512, 7x7 spatial
    # (the shape resnet18's feature extractor would emit).
    x = jax.random.normal(k_x, (4, FEATURE_DIM, 7, 7), jnp.float32)
    params = make_params(k_p)

    y = frozen_cnn_regressor_head(x, params)
    y = jax.block_until_ready(y)

    y_ref = _reference(x, params)
    if not bool(jnp.allclose(y, y_ref, atol=1e-3, rtol=1e-3)):
        raise AssertionError(f"kernel mismatch: {y} vs {y_ref}")

    print("KERNEL_OK")
</pallas_src>

<mosaic_0001>
module attributes {stable_mosaic.version = 11 : i64} {
  func.func @_regressor_kernel(%arg0: i32, %arg1: memref<8x49x512xf32, #tpu.memory_space<vmem>>, %arg2: memref<512x256xf32, #tpu.memory_space<vmem>>, %arg3: memref<1x256xf32, #tpu.memory_space<vmem>>, %arg4: memref<256x128xf32, #tpu.memory_space<vmem>>, %arg5: memref<1x128xf32, #tpu.memory_space<vmem>>, %arg6: memref<128x64xf32, #tpu.memory_space<vmem>>, %arg7: memref<1x64xf32, #tpu.memory_space<vmem>>, %arg8: memref<64x128xf32, #tpu.memory_space<vmem>>, %arg9: memref<1x128xf32, #tpu.memory_space<vmem>>, %arg10: memref<8x128xf32, #tpu.memory_space<vmem>>) attributes {dimension_semantics = [#tpu.dimension_semantics<parallel>], iteration_bounds = array<i64: 1>, scalar_prefetch = 0 : i64, scratch_operands = 0 : i64, tpu.core_type = #tpu.core_type<tc>, window_params = [{transform_indices = @transform_0, window_bounds = array<i64: 8, 49, 512>}, {pipeline_mode = #tpu.pipeline_mode<synchronous>, transform_indices = @transform_1, window_bounds = array<i64: 512, 256>}, {pipeline_mode = #tpu.pipeline_mode<synchronous>, transform_indices = @transform_2, window_bounds = array<i64: 1, 256>}, {pipeline_mode = #tpu.pipeline_mode<synchronous>, transform_indices = @transform_3, window_bounds = array<i64: 256, 128>}, {pipeline_mode = #tpu.pipeline_mode<synchronous>, transform_indices = @transform_4, window_bounds = array<i64: 1, 128>}, {pipeline_mode = #tpu.pipeline_mode<synchronous>, transform_indices = @transform_5, window_bounds = array<i64: 128, 64>}, {pipeline_mode = #tpu.pipeline_mode<synchronous>, transform_indices = @transform_6, window_bounds = array<i64: 1, 64>}, {pipeline_mode = #tpu.pipeline_mode<synchronous>, transform_indices = @transform_7, window_bounds = array<i64: 64, 128>}, {pipeline_mode = #tpu.pipeline_mode<synchronous>, transform_indices = @transform_8, window_bounds = array<i64: 1, 128>}, {transform_indices = @transform_9, window_bounds = array<i64: 8, 128>}]} {
    %c0 = arith.constant 0 : index
    %c0_0 = arith.constant 0 : index
    %c0_1 = arith.constant 0 : index
    %0 = vector.load %arg1[%c0, %c0_0, %c0_1] : memref<8x49x512xf32, #tpu.memory_space<vmem>>, vector<8x49x512xf32>
    %cst = arith.constant dense<0.000000e+00> : vector<8x512xf32>
    %1 = vector.multi_reduction <add>, %0, %cst [1] : vector<8x49x512xf32> to vector<8x512xf32>
    %c0_2 = arith.constant 0 : index
    %c0_3 = arith.constant 0 : index
    %2 = vector.load %arg2[%c0_2, %c0_3] : memref<512x256xf32, #tpu.memory_space<vmem>>, vector<512x256xf32>
    %cst_4 = arith.constant dense<0.000000e+00> : vector<8x256xf32>
    %3 = tpu.matmul %1, %2, %cst_4 {dimension_numbers = #tpu.dot_dimension_numbers<[1], [0], [0], [1], [0, 0, 1, 1], [], []>} : vector<8x512xf32>, vector<512x256xf32>, vector<8x256xf32> -> vector<8x256xf32>
    %c0_5 = arith.constant 0 : index
    %c0_6 = arith.constant 0 : index
    %4 = vector.load %arg3[%c0_5, %c0_6] : memref<1x256xf32, #tpu.memory_space<vmem>>, vector<1x256xf32>
    %5 = vector.broadcast %4 : vector<1x256xf32> to vector<8x256xf32>
    %6 = arith.addf %3, %5 : vector<8x256xf32>
    %cst_7 = arith.constant 0.000000e+00 : f32
    %7 = vector.broadcast %cst_7 : f32 to vector<8x256xf32>
    %8 = arith.maximumf %6, %7 : vector<8x256xf32>
    %c0_8 = arith.constant 0 : index
    %c0_9 = arith.constant 0 : index
    %9 = vector.load %arg4[%c0_8, %c0_9] : memref<256x128xf32, #tpu.memory_space<vmem>>, vector<256x128xf32>
    %cst_10 = arith.constant dense<0.000000e+00> : vector<8x128xf32>
    %10 = tpu.matmul %8, %9, %cst_10 {dimension_numbers = #tpu.dot_dimension_numbers<[1], [0], [0], [1], [0, 0, 1, 1], [], []>} : vector<8x256xf32>, vector<256x128xf32>, vector<8x128xf32> -> vector<8x128xf32>
    %c0_11 = arith.constant 0 : index
    %c0_12 = arith.constant 0 : index
    %11 = vector.load %arg5[%c0_11, %c0_12] : memref<1x128xf32, #tpu.memory_space<vmem>>, vector<1x128xf32>
    %12 = vector.broadcast %11 : vector<1x128xf32> to vector<8x128xf32>
    %13 = arith.addf %10, %12 : vector<8x128xf32>
    %cst_13 = arith.constant 0.000000e+00 : f32
    %14 = vector.broadcast %cst_13 : f32 to vector<8x128xf32>
    %15 = arith.maximumf %13, %14 : vector<8x128xf32>
    %c0_14 = arith.constant 0 : index
    %c0_15 = arith.constant 0 : index
    %16 = vector.load %arg6[%c0_14, %c0_15] : memref<128x64xf32, #tpu.memory_space<vmem>>, vector<128x64xf32>
    %cst_16 = arith.constant dense<0.000000e+00> : vector<8x64xf32>
    %17 = tpu.matmul %15, %16, %cst_16 {dimension_numbers = #tpu.dot_dimension_numbers<[1], [0], [0], [1], [0, 0, 1, 1], [], []>} : vector<8x128xf32>, vector<128x64xf32>, vector<8x64xf32> -> vector<8x64xf32>
    %c0_17 = arith.constant 0 : index
    %c0_18 = arith.constant 0 : index
    %18 = vector.load %arg7[%c0_17, %c0_18] : memref<1x64xf32, #tpu.memory_space<vmem>>, vector<1x64xf32>
    %19 = vector.broadcast %18 : vector<1x64xf32> to vector<8x64xf32>
    %20 = arith.addf %17, %19 : vector<8x64xf32>
    %cst_19 = arith.constant 0.000000e+00 : f32
    %21 = vector.broadcast %cst_19 : f32 to vector<8x64xf32>
    %22 = arith.maximumf %20, %21 : vector<8x64xf32>
    %c0_20 = arith.constant 0 : index
    %c0_21 = arith.constant 0 : index
    %23 = vector.load %arg8[%c0_20, %c0_21] : memref<64x128xf32, #tpu.memory_space<vmem>>, vector<64x128xf32>
    %cst_22 = arith.constant dense<0.000000e+00> : vector<8x128xf32>
    %24 = tpu.matmul %22, %23, %cst_22 {dimension_numbers = #tpu.dot_dimension_numbers<[1], [0], [0], [1], [0, 0, 1, 1], [], []>} : vector<8x64xf32>, vector<64x128xf32>, vector<8x128xf32> -> vector<8x128xf32>
    %c0_23 = arith.constant 0 : index
    %c0_24 = arith.constant 0 : index
    %25 = vector.load %arg9[%c0_23, %c0_24] : memref<1x128xf32, #tpu.memory_space<vmem>>, vector<1x128xf32>
    %26 = vector.broadcast %25 : vector<1x128xf32> to vector<8x128xf32>
    %27 = arith.addf %24, %26 : vector<8x128xf32>
    %c0_25 = arith.constant 0 : index
    %c0_26 = arith.constant 0 : index
    %28 = vector.load %arg10[%c0_25, %c0_26] : memref<8x128xf32, #tpu.memory_space<vmem>>, vector<8x128xf32>
    tpu.vector_store %arg10[%c0_25, %c0_26], %27 {strides = array<i32>} : memref<8x128xf32, #tpu.memory_space<vmem>>, vector<8x128xf32>,
    return
  }
  func.func @transform_0(%arg0: i32) -> (i32, i32, i32) {
    %c0_i32 = arith.constant 0 : i32
    %c0_i32_0 = arith.constant 0 : i32
    %c0_i32_1 = arith.constant 0 : i32
    return %arg0, %c0_i32, %c0_i32_0 : i32, i32, i32
  }
  func.func @transform_1(%arg0: i32) -> (i32, i32) {
    %c0_i32 = arith.constant 0 : i32
    %c0_i32_0 = arith.constant 0 : i32
    %c0_i32_1 = arith.constant 0 : i32
    return %c0_i32, %c0_i32_0 : i32, i32
  }
  func.func @transform_2(%arg0: i32) -> (i32, i32) {
    %c0_i32 = arith.constant 0 : i32
    %c0_i32_0 = arith.constant 0 : i32
    %c0_i32_1 = arith.constant 0 : i32
    return %c0_i32, %c0_i32_0 : i32, i32
  }
  func.func @transform_3(%arg0: i32) -> (i32, i32) {
    %c0_i32 = arith.constant 0 : i32
    %c0_i32_0 = arith.constant 0 : i32
    %c0_i32_1 = arith.constant 0 : i32
    return %c0_i32, %c0_i32_0 : i32, i32
  }
  func.func @transform_4(%arg0: i32) -> (i32, i32) {
    %c0_i32 = arith.constant 0 : i32
    %c0_i32_0 = arith.constant 0 : i32
    %c0_i32_1 = arith.constant 0 : i32
    return %c0_i32, %c0_i32_0 : i32, i32
  }
  func.func @transform_5(%arg0: i32) -> (i32, i32) {
    %c0_i32 = arith.constant 0 : i32
    %c0_i32_0 = arith.constant 0 : i32
    %c0_i32_1 = arith.constant 0 : i32
    return %c0_i32, %c0_i32_0 : i32, i32
  }
  func.func @transform_6(%arg0: i32) -> (i32, i32) {
    %c0_i32 = arith.constant 0 : i32
    %c0_i32_0 = arith.constant 0 : i32
    %c0_i32_1 = arith.constant 0 : i32
    return %c0_i32, %c0_i32_0 : i32, i32
  }
  func.func @transform_7(%arg0: i32) -> (i32, i32) {
    %c0_i32 = arith.constant 0 : i32
    %c0_i32_0 = arith.constant 0 : i32
    %c0_i32_1 = arith.constant 0 : i32
    return %c0_i32, %c0_i32_0 : i32, i32
  }
  func.func @transform_8(%arg0: i32) -> (i32, i32) {
    %c0_i32 = arith.constant 0 : i32
    %c0_i32_0 = arith.constant 0 : i32
    %c0_i32_1 = arith.constant 0 : i32
    return %c0_i32, %c0_i32_0 : i32, i32
  }
  func.func @transform_9(%arg0: i32) -> (i32, i32) {
    %c0_i32 = arith.constant 0 : i32
    %c0_i32_0 = arith.constant 0 : i32
    return %arg0, %c0_i32 : i32, i32
  }
}

</mosaic_0001>

<bundles_post_ra>
// kernel: tpu_custom_call.1
= control target key start
LH: loop header
LB: loop body
LE: loop exit
PB: predicated region body
PF: predicated region fallthrough
CT: control target
= control target key end

     0   :  { %vm262_vm0 = vcmask 1040384   ;;  %vm840_vm1 = vcmask 1041409   ;;  %vm842_vm2 = vcmask 1042434   ;;  %vm844_vm3 = vcmask 1043459   ;;  %s2620_s0 = inlined_call_operand.vmem [shape: f32[8,49,512], index: 0, kind: input, shape index: {}]   ;;  %s2621_s1 = inlined_call_operand.vmem [shape: f32[512,256], index: 1, kind: input, shape index: {}]   ;;  %s2622_s2 = inlined_call_operand.vmem [shape: f32[1,256], index: 2, kind: input, shape index: {}]   ;;  %s2623_s3 = inlined_call_operand.vmem [shape: f32[256,128], index: 3, kind: input, shape index: {}]   ;;  %s2624_s4 = inlined_call_operand.vmem [shape: f32[1,128], index: 4, kind: input, shape index: {}]   ;;  %s2625_s5 = inlined_call_operand.vmem [shape: f32[128,64], index: 5, kind: input, shape index: {}]   ;;  %s2626_s6 = inlined_call_operand.vmem [shape: f32[1,64], index: 6, kind: input, shape index: {}]   ;;  %s2627_s7 = inlined_call_operand.vmem [shape: f32[64,128], index: 7, kind: input, shape index: {}]   ;;  %s2628_s8 = inlined_call_operand.vmem [shape: f32[1,128], index: 8, kind: input, shape index: {}]   ;;  %s2629_s9 = inlined_call_operand.hbm [shape: f32[8,128], index: 9, kind: output, shape index: {}]  }
   0x1   :  { %v768_v0 = vld [vmem:[%s2621_s1 + $0x2f0] sm:$0xff]  ;;  %v766_v2 = vld [vmem:[%s2621_s1 + $0x2e0] sm:$0xff]  ;;  %v769_v62 = vld [vmem:[%s2621_s1 + $0x2f8] sm:$0xff]  ;;  %vm846_vm4 = vcmask 1044484   ;;  %vm848_vm5 = vcmask 1045509   ;;  %vm850_vm6 = vcmask 1046534  }
   0x2   :  { %v704_v1 = vld [vmem:[%s2621_s1 + $0xf0] sm:$0xff]  ;;  %919 = vmatpush.msra.mxu2 %v768_v0  ;;  %v702_v4 = vld [vmem:[%s2621_s1 + $0xe0] sm:$0xff]  ;;  %v705_v0 = vld [vmem:[%s2621_s1 + $0xf8] sm:$0xff]  ;;  %vm852_vm7 = vcmask 1047559  }
   0x3   :  { %879 = vmatpush.msra.mxu0 %v704_v1  ;;  %v800_v3 = vld [vmem:[%s2621_s1 + $0x3f0] sm:$0xff]  ;;  %v798_v7 = vld [vmem:[%s2621_s1 + $0x3e0] sm:$0xff]  ;;  %v801_v1 = vld [vmem:[%s2621_s1 + $0x3f8] sm:$0xff] }
   0x4   :  { %v736_v5 = vld [vmem:[%s2621_s1 + $0x1f0] sm:$0xff]  ;;  %939 = vmatpush.msra.mxu3 %v800_v3  ;;  %920 = vmatpush.msra.mxu2 %v766_v2  ;;  %v734_v9 = vld [vmem:[%s2621_s1 + $0x1e0] sm:$0xff]  ;;  %v767_v2 = vld [vmem:[%s2621_s1 + $0x2e8] sm:$0xff] }
   0x5   :  { %899 = vmatpush.msra.mxu1 %v736_v5  ;;  %v764_v6 = vld [vmem:[%s2621_s1 + $0x2d0] sm:$0xff]  ;;  %880 = vmatpush.msra.mxu0 %v702_v4  ;;  %v762_v11 = vld [vmem:[%s2621_s1 + $0x2c0] sm:$0xff]  ;;  %v703_v4 = vld [vmem:[%s2621_s1 + $0xe8] sm:$0xff] }
   0x6   :  { %v700_v8 = vld [vmem:[%s2621_s1 + $0xd0] sm:$0xff]  ;;  %940 = vmatpush.msra.mxu3 %v798_v7  ;;  %v698_v12 = vld [vmem:[%s2621_s1 + $0xc0] sm:$0xff]  ;;  %921 = vmatpush.msra.mxu2 %v764_v6  ;;  %v737_v5 = vld [vmem:[%s2621_s1 + $0x1f8] sm:$0xff] }
   0x7   :  { %v796_v10 = vld [vmem:[%s2621_s1 + $0x3d0] sm:$0xff]  ;;  %900 = vmatpush.msra.mxu1 %v734_v9  ;;  %881 = vmatpush.msra.mxu0 %v700_v8  ;;  %v794_v14 = vld [vmem:[%s2621_s1 + $0x3c0] sm:$0xff]  ;;  %v765_v6 = vld [vmem:[%s2621_s1 + $0x2d8] sm:$0xff] }
   0x8   :  { %v732_v13 = vld [vmem:[%s2621_s1 + $0x1d0] sm:$0xff]  ;;  %v730_v15 = vld [vmem:[%s2621_s1 + $0x1c0] sm:$0xff]  ;;  %941 = vmatpush.msra.mxu3 %v796_v10  ;;  %922 = vmatpush.msra.mxu2 %v762_v11  ;;  %v799_v7 = vld [vmem:[%s2621_s1 + $0x3e8] sm:$0xff] }
   0x9   :  { %901 = vmatpush.msra.mxu1 %v732_v13  ;;  %v760_v16 = vld [vmem:[%s2621_s1 + $0x2b0] sm:$0xff]  ;;  %882 = vmatpush.msra.mxu0 %v698_v12  ;;  %v758_v20 = vld [vmem:[%s2621_s1 + $0x2a0] sm:$0xff]  ;;  %v701_v8 = vld [vmem:[%s2621_s1 + $0xd8] sm:$0xff] }
   0xa   :  { %v696_v17 = vld [vmem:[%s2621_s1 + $0xb0] sm:$0xff]  ;;  %942 = vmatpush.msra.mxu3 %v794_v14  ;;  %v694_v21 = vld [vmem:[%s2621_s1 + $0xa0] sm:$0xff]  ;;  %923 = vmatpush.msra.mxu2 %v760_v16  ;;  %v735_v9 = vld [vmem:[%s2621_s1 + $0x1e8] sm:$0xff] }
   0xb   :  { %v792_v18 = vld [vmem:[%s2621_s1 + $0x3b0] sm:$0xff]  ;;  %902 = vmatpush.msra.mxu1 %v730_v15  ;;  %883 = vmatpush.msra.mxu0 %v696_v17  ;;  %v790_v22 = vld [vmem:[%s2621_s1 + $0x3a0] sm:$0xff]  ;;  %v763_v10 = vld [vmem:[%s2621_s1 + $0x2c8] sm:$0xff] }
   0xc   :  { %v728_v19 = vld [vmem:[%s2621_s1 + $0x1b0] sm:$0xff]  ;;  %v726_v23 = vld [vmem:[%s2621_s1 + $0x1a0] sm:$0xff]  ;;  %943 = vmatpush.msra.mxu3 %v792_v18  ;;  %924 = vmatpush.msra.mxu2 %v758_v20  ;;  %v797_v11 = vld [vmem:[%s2621_s1 + $0x3d8] sm:$0xff] }
   0xd   :  { %903 = vmatpush.msra.mxu1 %v728_v19  ;;  %v756_v24 = vld [vmem:[%s2621_s1 + $0x290] sm:$0xff]  ;;  %884 = vmatpush.msra.mxu0 %v694_v21  ;;  %v754_v28 = vld [vmem:[%s2621_s1 + $0x280] sm:$0xff]  ;;  %v699_v12 = vld [vmem:[%s2621_s1 + $0xc8] sm:$0xff] }
   0xe   :  { %v692_v25 = vld [vmem:[%s2621_s1 + $0x90] sm:$0xff]  ;;  %944 = vmatpush.msra.mxu3 %v790_v22  ;;  %v690_v29 = vld [vmem:[%s2621_s1 + $0x80] sm:$0xff]  ;;  %925 = vmatpush.msra.mxu2 %v756_v24  ;;  %v733_v13 = vld [vmem:[%s2621_s1 + $0x1d8] sm:$0xff] }
   0xf   :  { %v788_v26 = vld [vmem:[%s2621_s1 + $0x390] sm:$0xff]  ;;  %904 = vmatpush.msra.mxu1 %v726_v23  ;;  %885 = vmatpush.msra.mxu0 %v692_v25  ;;  %v786_v30 = vld [vmem:[%s2621_s1 + $0x380] sm:$0xff]  ;;  %v761_v14 = vld [vmem:[%s2621_s1 + $0x2b8] sm:$0xff] }
  0x10   :  { %v724_v27 = vld [vmem:[%s2621_s1 + $0x190] sm:$0xff]  ;;  %v722_v31 = vld [vmem:[%s2621_s1 + $0x180] sm:$0xff]  ;;  %945 = vmatpush.msra.mxu3 %v788_v26  ;;  %926 = vmatpush.msra.mxu2 %v754_v28  ;;  %v795_v15 = vld [vmem:[%s2621_s1 + $0x3c8] sm:$0xff] }
  0x11   :  { %905 = vmatpush.msra.mxu1 %v724_v27  ;;  %v752_v32 = vld [vmem:[%s2621_s1 + $0x270] sm:$0xff]  ;;  %886 = vmatpush.msra.mxu0 %v690_v29  ;;  %v750_v36 = vld [vmem:[%s2621_s1 + $0x260] sm:$0xff]  ;;  %v697_v16 = vld [vmem:[%s2621_s1 + $0xb8] sm:$0xff] }
  0x12   :  { %v688_v33 = vld [vmem:[%s2621_s1 + $0x70] sm:$0xff]  ;;  %946 = vmatpush.msra.mxu3 %v786_v30  ;;  %v686_v37 = vld [vmem:[%s2621_s1 + $0x60] sm:$0xff]  ;;  %927 = vmatpush.msra.mxu2 %v752_v32  ;;  %v731_v20 = vld [vmem:[%s2621_s1 + $0x1c8] sm:$0xff] }
  0x13   :  { %v784_v34 = vld [vmem:[%s2621_s1 + $0x370] sm:$0xff]  ;;  %906 = vmatpush.msra.mxu1 %v722_v31  ;;  %887 = vmatpush.msra.mxu0 %v688_v33  ;;  %v782_v38 = vld [vmem:[%s2621_s1 + $0x360] sm:$0xff]  ;;  %v759_v21 = vld [vmem:[%s2621_s1 + $0x2a8] sm:$0xff] }
  0x14   :  { %v720_v35 = vld [vmem:[%s2621_s1 + $0x170] sm:$0xff]  ;;  %v718_v39 = vld [vmem:[%s2621_s1 + $0x160] sm:$0xff]  ;;  %947 = vmatpush.msra.mxu3 %v784_v34  ;;  %928 = vmatpush.msra.mxu2 %v750_v36  ;;  %v793_v22 = vld [vmem:[%s2621_s1 + $0x3b8] sm:$0xff] }
  0x15   :  { %907 = vmatpush.msra.mxu1 %v720_v35  ;;  %v748_v40 = vld [vmem:[%s2621_s1 + $0x250] sm:$0xff]  ;;  %888 = vmatpush.msra.mxu0 %v686_v37  ;;  %v746_v44 = vld [vmem:[%s2621_s1 + $0x240] sm:$0xff]  ;;  %v695_v24 = vld [vmem:[%s2621_s1 + $0xa8] sm:$0xff] }
  0x16   :  { %v684_v41 = vld [vmem:[%s2621_s1 + $0x50] sm:$0xff]  ;;  %948 = vmatpush.msra.mxu3 %v782_v38  ;;  %v682_v45 = vld [vmem:[%s2621_s1 + $0x40] sm:$0xff]  ;;  %929 = vmatpush.msra.mxu2 %v748_v40  ;;  %v729_v25 = vld [vmem:[%s2621_s1 + $0x1b8] sm:$0xff] }
  0x17   :  { %v780_v42 = vld [vmem:[%s2621_s1 + $0x350] sm:$0xff]  ;;  %908 = vmatpush.msra.mxu1 %v718_v39  ;;  %889 = vmatpush.msra.mxu0 %v684_v41  ;;  %v778_v46 = vld [vmem:[%s2621_s1 + $0x340] sm:$0xff]  ;;  %v757_v29 = vld [vmem:[%s2621_s1 + $0x298] sm:$0xff] }
  0x18   :  { %v716_v43 = vld [vmem:[%s2621_s1 + $0x150] sm:$0xff]  ;;  %v714_v47 = vld [vmem:[%s2621_s1 + $0x140] sm:$0xff]  ;;  %949 = vmatpush.msra.mxu3 %v780_v42  ;;  %930 = vmatpush.msra.mxu2 %v746_v44  ;;  %v791_v30 = vld [vmem:[%s2621_s1 + $0x3a8] sm:$0xff] }
  0x19   :  { %909 = vmatpush.msra.mxu1 %v716_v43  ;;  %v744_v48 = vld [vmem:[%s2621_s1 + $0x230] sm:$0xff]  ;;  %890 = vmatpush.msra.mxu0 %v682_v45  ;;  %v742_v52 = vld [vmem:[%s2621_s1 + $0x220] sm:$0xff]  ;;  %v693_v35 = vld [vmem:[%s2621_s1 + $0x98] sm:$0xff] }
  0x1a   :  { %v680_v49 = vld [vmem:[%s2621_s1 + $0x30] sm:$0xff]  ;;  %950 = vmatpush.msra.mxu3 %v778_v46  ;;  %v678_v53 = vld [vmem:[%s2621_s1 + $0x20] sm:$0xff]  ;;  %931 = vmatpush.msra.mxu2 %v744_v48  ;;  %v727_v36 = vld [vmem:[%s2621_s1 + $0x1a8] sm:$0xff] }
  0x1b   :  { %v776_v50 = vld [vmem:[%s2621_s1 + $0x330] sm:$0xff]  ;;  %910 = vmatpush.msra.mxu1 %v714_v47  ;;  %891 = vmatpush.msra.mxu0 %v680_v49  ;;  %v774_v54 = vld [vmem:[%s2621_s1 + $0x320] sm:$0xff]  ;;  %v755_v40 = vld [vmem:[%s2621_s1 + $0x288] sm:$0xff] }
  0x1c   :  { %v712_v51 = vld [vmem:[%s2621_s1 + $0x130] sm:$0xff]  ;;  %v710_v55 = vld [vmem:[%s2621_s1 + $0x120] sm:$0xff]  ;;  %951 = vmatpush.msra.mxu3 %v776_v50  ;;  %932 = vmatpush.msra.mxu2 %v742_v52  ;;  %v789_v41 = vld [vmem:[%s2621_s1 + $0x398] sm:$0xff] }
  0x1d   :  { %911 = vmatpush.msra.mxu1 %v712_v51  ;;  %v740_v56 = vld [vmem:[%s2621_s1 + $0x210] sm:$0xff]  ;;  %892 = vmatpush.msra.mxu0 %v678_v53  ;;  %v738_v60 = vld [vmem:[%s2621_s1 + $0x200] sm:$0xff]  ;;  %v691_v47 = vld [vmem:[%s2621_s1 + $0x88] sm:$0xff] }
  0x1e   :  { %v676_v57 = vld [vmem:[%s2621_s1 + $0x10] sm:$0xff]  ;;  %952 = vmatpush.msra.mxu3 %v774_v54  ;;  %v674_v61 = vld [vmem:[%s2621_s1] sm:$0xff]  ;;  %933 = vmatpush.msra.mxu2 %v740_v56  ;;  %v725_v48 = vld [vmem:[%s2621_s1 + $0x198] sm:$0xff] }
  0x1f   :  { %v772_v58 = vld [vmem:[%s2621_s1 + $0x310] sm:$0xff]  ;;  %912 = vmatpush.msra.mxu1 %v710_v55  ;;  %893 = vmatpush.msra.mxu0 %v676_v57  ;;  %v770_v63 = vld [vmem:[%s2621_s1 + $0x300] sm:$0xff]  ;;  %v753_v53 = vld [vmem:[%s2621_s1 + $0x278] sm:$0xff] }
  0x20   :  { %v708_v59 = vld [vmem:[%s2621_s1 + $0x110] sm:$0xff]  ;;  %953 = vmatpush.msra.mxu3 %v772_v58  ;;  %934 = vmatpush.msra.mxu2 %v738_v60  ;;  %v706_v3 = vld [vmem:[%s2621_s1 + $0x100] sm:$0xff]  ;;  %v787_v54 = vld [vmem:[%s2621_s1 + $0x388] sm:$0xff] }
  0x21   :  { %913 = vmatpush.msra.mxu1 %v708_v59  ;;  %894 = vmatpush.msra.mxu0 %v674_v61  ;;  %v35_v17 = vld [vmem:[%s2620_s0 + $0x10] sm:$0xff]  ;;  %v689_v60 = vld [vmem:[%s2621_s1 + $0x78] sm:$0xff]  ;;  %v723_v61 = vld [vmem:[%s2621_s1 + $0x188] sm:$0xff] }
  0x22   :  { %999 = vmatpush.msrb.mxu2 %v769_v62  ;;  %954 = vmatpush.msra.mxu3 %v770_v63  ;;  %v39_v18 = vld [vmem:[%s2620_s0 + $0x30] sm:$0xff] }
  0x23   :  { %959 = vmatpush.msrb.mxu0 %v705_v0  ;;  %914 = vmatpush.msra.mxu1 %v706_v3  ;;  %v43_v19 = vld [vmem:[%s2620_s0 + $0x50] sm:$0xff]  ;;  %v284_v23 = vadd.f32 %v39_v18, %v35_v17 }
  0x24   :  { %1019 = vmatpush.msrb.mxu3 %v801_v1  ;;  %1000 = vmatpush.msrb.mxu2 %v767_v2  ;;  %v47_v26 = vld [vmem:[%s2620_s0 + $0x70] sm:$0xff] }
  0x25   :  { %960 = vmatpush.msrb.mxu0 %v703_v4  ;;  %979 = vmatpush.msrb.mxu1 %v737_v5  ;;  %v63_v27 = vld [vmem:[%s2620_s0 + $0xf0] sm:$0xff]  ;;  %v285_v33 = vadd.f32 %v284_v23, %v43_v19  ;;  %v751_v4 = vld [vmem:[%s2621_s1 + $0x268] sm:$0xff]  ;;  %v785_v5 = vld [vmem:[%s2621_s1 + $0x378] sm:$0xff] }
  0x26   :  { %1001 = vmatpush.msrb.mxu2 %v765_v6  ;;  %1020 = vmatpush.msrb.mxu3 %v799_v7  ;;  %v67_v28 = vld [vmem:[%s2620_s0 + $0x110] sm:$0xff] }
  0x27   :  { %961 = vmatpush.msrb.mxu0 %v701_v8  ;;  %980 = vmatpush.msrb.mxu1 %v735_v9  ;;  %v51_v31 = vld [vmem:[%s2620_s0 + $0x90] sm:$0xff]  ;;  %v336_v34 = vadd.f32 %v67_v28, %v63_v27  ;;  %v286_v45 = vadd.f32 %v285_v33, %v47_v26  ;;  %v685_v28 = vld [vmem:[%s2621_s1 + $0x58] sm:$0xff] }
  0x28   :  { %1002 = vmatpush.msrb.mxu2 %v763_v10  ;;  %1021 = vmatpush.msrb.mxu3 %v797_v11  ;;  %v71_v32 = vld [vmem:[%s2620_s0 + $0x130] sm:$0xff] }
  0x29   :  { %962 = vmatpush.msrb.mxu0 %v699_v12  ;;  %981 = vmatpush.msrb.mxu1 %v733_v13  ;;  %v55_v37 = vld [vmem:[%s2620_s0 + $0xb0] sm:$0xff]  ;;  %v337_v46 = vadd.f32 %v336_v34, %v71_v32  ;;  %v287_v58 = vadd.f32 %v286_v45, %v51_v31  ;;  %v687_v12 = vld [vmem:[%s2621_s1 + $0x68] sm:$0xff]  ;;  %v721_v13 = vld [vmem:[%s2621_s1 + $0x178] sm:$0xff] }
  0x2a   :  { %1003 = vmatpush.msrb.mxu2 %v761_v14  ;;  %1022 = vmatpush.msrb.mxu3 %v795_v15  ;;  %v75_v38 = vld [vmem:[%s2620_s0 + $0x150] sm:$0xff] }
  0x2b   :  { %v91_v39 = vld [vmem:[%s2620_s0 + $0x1d0] sm:$0xff]  ;;  %963 = vmatpush.msrb.mxu0 %v697_v16  ;;  %982 = vmatpush.msrb.mxu1 %v731_v20  ;;  %v338_v59 = vadd.f32 %v337_v46, %v75_v38  ;;  %v288_v10 = vadd.f32 %v287_v58, %v55_v37 }
  0x2c   :  { %v59_v42 = vld [vmem:[%s2620_s0 + $0xd0] sm:$0x1]  ;;  %1004 = vmatpush.msrb.mxu2 %v759_v21  ;;  %1023 = vmatpush.msrb.mxu3 %v793_v22  ;;  %v749_v21 = vld [vmem:[%s2621_s1 + $0x258] sm:$0xff]  ;;  %v783_v22 = vld [vmem:[%s2621_s1 + $0x368] sm:$0xff] }
  0x2d   :  { %v95_v43 = vld [vmem:[%s2620_s0 + $0x1f0] sm:$0xff]  ;;  %964 = vmatpush.msrb.mxu0 %v695_v24  ;;  %983 = vmatpush.msrb.mxu1 %v729_v25  ;;  %v289_v1 = vsel %vm262_vm0, %v59_v42, 0.0 }
  0x2e   :  { %v99_v44 = vld [vmem:[%s2620_s0 + $0x210] sm:$0xff]  ;;  %v388_v52 = vadd.f32 %v95_v43, %v91_v39  ;;  %1005 = vmatpush.msrb.mxu2 %v757_v29  ;;  %1024 = vmatpush.msrb.mxu3 %v791_v30  ;;  %v290_v26 = vadd.f32 %v289_v1, %v288_v10  ;;  %v719_v29 = vld [vmem:[%s2621_s1 + $0x168] sm:$0xff] }
  0x2f   :  { %v79_v49 = vld [vmem:[%s2620_s0 + $0x170] sm:$0xff]  ;;  %965 = vmatpush.msrb.mxu0 %v693_v35  ;;  %984 = vmatpush.msrb.mxu1 %v727_v36 }
  0x30   :  { %v87_v50 = vld [vmem:[%s2620_s0 + $0x1b0] sm:$0x1]  ;;  %v389_v2 = vadd.f32 %v388_v52, %v99_v44  ;;  %v339_v11 = vadd.f32 %v338_v59, %v79_v49  ;;  %1006 = vmatpush.msrb.mxu2 %v755_v40  ;;  %1025 = vmatpush.msrb.mxu3 %v789_v41  ;;  %v291_v40 = vrot.slane %v290_v26, 4  ;;  %v781_v52 = vld [vmem:[%s2621_s1 + $0x358] sm:$0xff] }
  0x31   :  { %v103_v51 = vld [vmem:[%s2620_s0 + $0x230] sm:$0xff]  ;;  %v341_v17 = vsel %vm262_vm0, %v87_v50, 0.0  ;;  %966 = vmatpush.msrb.mxu0 %v691_v47  ;;  %985 = vmatpush.msrb.mxu1 %v725_v48 }
  0x32   :  { %v119_v55 = vld [vmem:[%s2620_s0 + $0x2b0] sm:$0xff]  ;;  %v390_v18 = vadd.f32 %v389_v2, %v103_v51  ;;  %1007 = vmatpush.msrb.mxu2 %v753_v53  ;;  %1026 = vmatpush.msrb.mxu3 %v787_v54  ;;  %v747_v51 = vld [vmem:[%s2621_s1 + $0x248] sm:$0xff]  ;;  %v292_v54 = vadd.f32 %v291_v40, %v290_v26 }
  0x33   :  { %v123_v56 = vld [vmem:[%s2620_s0 + $0x2d0] sm:$0xff]  ;;  %967 = vmatpush.msrb.mxu0 %v689_v60  ;;  %986 = vmatpush.msrb.mxu1 %v723_v61 }
  0x34   :  { %v127_v57 = vld [vmem:[%s2620_s0 + $0x2f0] sm:$0xff]  ;;  %v440_v3 = vadd.f32 %v123_v56, %v119_v55  ;;  %1008 = vmatpush.msrb.mxu2 %v751_v4  ;;  %1027 = vmatpush.msrb.mxu3 %v785_v5  ;;  %v293_v4 = vrot.slane %v292_v54, 2 }
  0x35   :  { %v83_v62 = vld [vmem:[%s2620_s0 + $0x190] sm:$0xff]  ;;  %968 = vmatpush.msrb.mxu0 %v687_v12  ;;  %987 = vmatpush.msrb.mxu1 %v721_v13 }
  0x36   :  { %v107_v63 = vld [vmem:[%s2620_s0 + $0x250] sm:$0xff]  ;;  %v441_v19 = vadd.f32 %v440_v3, %v127_v57  ;;  %v340_v27 = vadd.f32 %v339_v11, %v83_v62  ;;  %1009 = vmatpush.msrb.mxu2 %v749_v21  ;;  %1028 = vmatpush.msrb.mxu3 %v783_v22  ;;  %v779_v21 = vld [vmem:[%s2621_s1 + $0x348] sm:$0xff] }
  0x37   :  { %v115_v0 = vld [vmem:[%s2620_s0 + $0x290] sm:$0x1]  ;;  %v391_v33 = vadd.f32 %v390_v18, %v107_v63  ;;  %969 = vmatpush.msrb.mxu0 %v685_v28  ;;  %988 = vmatpush.msrb.mxu1 %v719_v29 }
  0x38   :  { %v111_v6 = vld [vmem:[%s2620_s0 + $0x270] sm:$0xff]  ;;  %v393_v34 = vsel %vm262_vm0, %v115_v0, 0.0  ;;  %v342_v41 = vadd.f32 %v341_v17, %v340_v27  ;;  %1010 = vmatpush.msrb.mxu2 %v747_v51  ;;  %1029 = vmatpush.msrb.mxu3 %v781_v52 }
  0x39   :  { %v131_v7 = vld [vmem:[%s2620_s0 + $0x310] sm:$0xff]  ;;  %v392_v47 = vadd.f32 %v391_v33, %v111_v6 }
  0x3a   :  { %v147_v8 = vld [vmem:[%s2620_s0 + $0x390] sm:$0xff]  ;;  %v442_v35 = vadd.f32 %v441_v19, %v131_v7  ;;  %v343_v55 = vrot.slane %v342_v41, 4  ;;  %v717_v19 = vld [vmem:[%s2621_s1 + $0x158] sm:$0xff]  ;;  %1030 = vmatpush.msrb.mxu3 %v779_v21  ;;  %v113_v21 = vld [vmem:[%s2620_s0 + $0x280] sm:$0x1] }
  0x3b   :  { %v151_v9 = vld [vmem:[%s2620_s0 + $0x3b0] sm:$0xff]  ;;  %v394_v61 = vadd.f32 %v393_v34, %v392_v47  ;;  %989 = vmatpush.msrb.mxu1 %v717_v19  ;;  %v37_v47 = vld [vmem:[%s2620_s0 + $0x20] sm:$0xff] }
  0x3c   :  { %v135_v14 = vld [vmem:[%s2620_s0 + $0x330] sm:$0xff]  ;;  %v492_v20 = vadd.f32 %v151_v9, %v147_v8  ;;  %v344_v5 = vadd.f32 %v343_v55, %v342_v41  ;;  %v89_v19 = vld [vmem:[%s2620_s0 + $0x1c0] sm:$0xff] }
  0x3d   :  { %v143_v15 = vld [vmem:[%s2620_s0 + $0x370] sm:$0x1]  ;;  %v443_v48 = vadd.f32 %v442_v35, %v135_v14  ;;  %v395_v10 = vrot.slane %v394_v61, 4  ;;  %v683_v14 = vld [vmem:[%s2621_s1 + $0x48] sm:$0xff] }
  0x3e   :  { %v155_v16 = vld [vmem:[%s2620_s0 + $0x3d0] sm:$0xff]  ;;  %v445_v42 = vsel %vm262_vm0, %v143_v15, 0.0  ;;  %v294_v15 = vadd.f32 %v293_v4, %v292_v54  ;;  %970 = vmatpush.msrb.mxu0 %v683_v14  ;;  %v61_v4 = vld [vmem:[%s2620_s0 + $0xe0] sm:$0xff] }
  0x3f   :  { %v159_v23 = vld [vmem:[%s2620_s0 + $0x3f0] sm:$0xff]  ;;  %v493_v36 = vadd.f32 %v492_v20, %v155_v16  ;;  %v345_v16 = vrot.slane %v344_v5, 2  ;;  %v745_v20 = vld [vmem:[%s2621_s1 + $0x238] sm:$0xff] }
  0x40   :  { %v171_v24 = vld [vmem:[%s2620_s0 + $0x450] sm:$0x1]  ;;  %1011 = vmatpush.msrb.mxu2 %v745_v20  ;;  %v295_v28 = vrot.slane %v294_v15, 1  ;;  %v93_v20 = vld [vmem:[%s2620_s0 + $0x1e0] sm:$0xff] }
  0x41   :  { %v175_v25 = vld [vmem:[%s2620_s0 + $0x470] sm:$0xff]  ;;  %v494_v49 = vadd.f32 %v493_v36, %v159_v23  ;;  %v497_v50 = vsel %vm262_vm0, %v171_v24, 0.0  ;;  %v396_v23 = vadd.f32 %v395_v10, %v394_v61  ;;  %v346_v29 = vadd.f32 %v345_v16, %v344_v5  ;;  %v65_v5 = vld [vmem:[%s2620_s0 + $0x100] sm:$0xff] }
  0x42   :  { %v139_v30 = vld [vmem:[%s2620_s0 + $0x350] sm:$0xff]  ;;  %v69_v16 = vld [vmem:[%s2620_s0 + $0x120] sm:$0xff] }
  0x43   :  { %v179_v31 = vld [vmem:[%s2620_s0 + $0x490] sm:$0xff]  ;;  %v444_v62 = vadd.f32 %v443_v48, %v139_v30  ;;  %v397_v33 = vrot.slane %v396_v23, 2 }
  0x44   :  { %v183_v32 = vld [vmem:[%s2620_s0 + $0x4b0] sm:$0xff]  ;;  %v544_v43 = vadd.f32 %v179_v31, %v175_v25 }
  0x45   :  { %v163_v37 = vld [vmem:[%s2620_s0 + $0x410] sm:$0xff]  ;;  %v446_v11 = vadd.f32 %v445_v42, %v444_v62  ;;  %v398_v42 = vadd.f32 %v397_v33, %v396_v23  ;;  %v310_v23 = vadd.f32 %v65_v5, %v61_v4  ;;  %v117_v33 = vld [vmem:[%s2620_s0 + $0x2a0] sm:$0xff] }
  0x46   :  { %v187_v38 = vld [vmem:[%s2620_s0 + $0x4d0] sm:$0xff]  ;;  %v545_v56 = vadd.f32 %v544_v43, %v183_v32  ;;  %v495_v63 = vadd.f32 %v494_v49, %v163_v37 }
  0x47   :  { %v199_v39 = vld [vmem:[%s2620_s0 + $0x530] sm:$0x1]  ;;  %v447_v24 = vrot.slane %v446_v11, 4 }
  0x48   :  { %v203_v44 = vld [vmem:[%s2620_s0 + $0x550] sm:$0xff]  ;;  %v549_v0 = vsel %vm262_vm0, %v199_v39, 0.0  ;;  %v546_v6 = vadd.f32 %v545_v56, %v187_v38  ;;  %v296_v38 = vadd.f32 %v295_v28, %v294_v15  ;;  %v347_v39 = vrot.slane %v346_v29, 1  ;;  %v49_v15 = vld [vmem:[%s2620_s0 + $0x80] sm:$0xff] }
  0x49   :  { %v207_v45 = vld [vmem:[%s2620_s0 + $0x570] sm:$0xff]  ;;  %v448_v34 = vadd.f32 %v447_v24, %v446_v11  ;;  %v73_v28 = vld [vmem:[%s2620_s0 + $0x140] sm:$0xff] }
  0x4a   :  { %v211_v46 = vld [vmem:[%s2620_s0 + $0x590] sm:$0xff]  ;;  %v596_v57 = vadd.f32 %v207_v45, %v203_v44  ;;  %v348_v49 = vadd.f32 %v347_v39, %v346_v29  ;;  %v97_v29 = vld [vmem:[%s2620_s0 + $0x200] sm:$0xff] }
  0x4b   :  { %v167_v53 = vld [vmem:[%s2620_s0 + $0x430] sm:$0xff]  ;;  %v449_v43 = vrot.slane %v448_v34, 2 }
  0x4c   :  { %v191_v58 = vld [vmem:[%s2620_s0 + $0x4f0] sm:$0xff]  ;;  %v597_v7 = vadd.f32 %v596_v57, %v211_v46  ;;  %v496_v12 = vadd.f32 %v495_v63, %v167_v53  ;;  %v33_v46 = vld [vmem:[%s2620_s0] sm:$0xff]  ;;  %v399_v53 = vrot.slane %v398_v42, 1  ;;  %v861_v61 = vsel %vm840_vm1, %v348_v49, %v296_v38 }
  0x4d   :  { %v215_v59 = vld [vmem:[%s2620_s0 + $0x5b0] sm:$0xff]  ;;  %v547_v17 = vadd.f32 %v546_v6, %v191_v58  ;;  %v450_v54 = vadd.f32 %v449_v43, %v448_v34  ;;  %v41_v57 = vld [vmem:[%s2620_s0 + $0x40] sm:$0xff]  ;;  %v257_v62 = vadd.f32 %v37_v47, %v33_v46  ;;  %v1876_v43 = vsel %vm262_vm0, %v113_v21, 0.0 }
  0x4e   :  { %v227_v60 = vld [vmem:[%s2620_s0 + $0x610] sm:$0x1]  ;;  %v598_v18 = vadd.f32 %v597_v7, %v215_v59  ;;  %v498_v25 = vadd.f32 %v497_v50, %v496_v12  ;;  %v57_v58 = vld [vmem:[%s2620_s0 + $0xc0] sm:$0x1]  ;;  %v400_v63 = vadd.f32 %v399_v53, %v398_v42  ;;  %v362_v42 = vadd.f32 %v93_v20, %v89_v19 }
  0x4f   :  { %v195_v1 = vld [vmem:[%s2620_s0 + $0x510] sm:$0xff]  ;;  %v601_v13 = vsel %vm262_vm0, %v227_v60, 0.0  ;;  %v263_v10 = vsel %vm262_vm0, %v57_v58, 0.0  ;;  %v121_v34 = vld [vmem:[%s2620_s0 + $0x2c0] sm:$0xff] }
  0x50   :  { %v231_v2 = vld [vmem:[%s2620_s0 + $0x630] sm:$0xff]  ;;  %v548_v30 = vadd.f32 %v547_v17, %v195_v1  ;;  %v499_v35 = vrot.slane %v498_v25, 4  ;;  %v862_v14 = vsel %vm842_vm2, %v400_v63, %v861_v61  ;;  %v125_v46 = vld [vmem:[%s2620_s0 + $0x2e0] sm:$0xff] }
  0x51   :  { %v235_v3 = vld [vmem:[%s2620_s0 + $0x650] sm:$0xff]  ;;  %v145_v47 = vld [vmem:[%s2620_s0 + $0x380] sm:$0xff] }
  0x52   :  { %v219_v8 = vld [vmem:[%s2620_s0 + $0x5d0] sm:$0xff]  ;;  %v648_v26 = vadd.f32 %v235_v3, %v231_v2  ;;  %v550_v40 = vadd.f32 %v549_v0, %v548_v30  ;;  %v500_v44 = vadd.f32 %v499_v35, %v498_v25  ;;  %v451_v0 = vrot.slane %v450_v54, 1  ;;  %v45_v3 = vld [vmem:[%s2620_s0 + $0x60] sm:$0xff] }
  0x53   :  { %v239_v9 = vld [vmem:[%s2620_s0 + $0x670] sm:$0xff]  ;;  %v599_v31 = vadd.f32 %v598_v18, %v219_v8  ;;  %v85_v8 = vld [vmem:[%s2620_s0 + $0x1a0] sm:$0x1] }
  0x54   :  { %v223_v22 = vld [vmem:[%s2620_s0 + $0x5f0] sm:$0xff]  ;;  %v649_v36 = vadd.f32 %v648_v26, %v239_v9  ;;  %v551_v50 = vrot.slane %v550_v40, 4  ;;  %v501_v55 = vrot.slane %v500_v44, 2  ;;  %v258_v9 = vadd.f32 %v257_v62, %v41_v57  ;;  %v141_v35 = vld [vmem:[%s2620_s0 + $0x360] sm:$0x1] }
  0x55   :  { %v243_v27 = vld [vmem:[%s2620_s0 + $0x690] sm:$0xff]  ;;  %v600_v41 = vadd.f32 %v599_v31, %v223_v22  ;;  %v452_v11 = vadd.f32 %v451_v0, %v450_v54  ;;  %v315_v30 = vsel %vm262_vm0, %v85_v8, 0.0  ;;  %v169_v53 = vld [vmem:[%s2620_s0 + $0x440] sm:$0x1]  ;;  %v363_v54 = vadd.f32 %v362_v42, %v97_v29 }
  0x56   :  { %v255_v32 = vld [vmem:[%s2620_s0 + $0x6f0] sm:$0x1]  ;;  %v650_v45 = vadd.f32 %v649_v36, %v243_v27  ;;  %v552_v59 = vadd.f32 %v551_v50, %v550_v40  ;;  %v502_v1 = vadd.f32 %v501_v55, %v500_v44  ;;  %v259_v22 = vadd.f32 %v258_v9, %v45_v3  ;;  %v53_v27 = vld [vmem:[%s2620_s0 + $0xa0] sm:$0xff] }
  0x57   :  { %v247_v37 = vld [vmem:[%s2620_s0 + $0x6b0] sm:$0xff]  ;;  %v602_v51 = vadd.f32 %v601_v13, %v600_v41  ;;  %v653_v52 = vsel %vm262_vm0, %v255_v32, 0.0  ;;  %v863_v26 = vsel %vm844_vm3, %v452_v11, %v862_v14  ;;  %v77_v40 = vld [vmem:[%s2620_s0 + $0x160] sm:$0xff]  ;;  %v414_v55 = vadd.f32 %v121_v34, %v117_v33 }
  0x58   :  { %v251_v48 = vld [vmem:[%s2620_s0 + $0x6d0] sm:$0xff]  ;;  %v651_v56 = vadd.f32 %v650_v45, %v247_v37  ;;  %v553_v6 = vrot.slane %v552_v59, 2  ;;  %v503_v12 = vrot.slane %v502_v1, 1  ;;  %v260_v36 = vadd.f32 %v259_v22, %v49_v15  ;;  %v101_v41 = vld [vmem:[%s2620_s0 + $0x220] sm:$0xff] }
  0x59   :  { %v603_v60 = vrot.slane %v602_v51, 4  ;;  %v311_v37 = vadd.f32 %v310_v23, %v69_v16  ;;  %v153_v61 = vld [vmem:[%s2620_s0 + $0x3c0] sm:$0xff]  ;;  %v364_v4 = vadd.f32 %v363_v54, %v101_v41  ;;  %v415_v5 = vadd.f32 %v414_v55, %v125_v46 }
  0x5a   :  { %v652_v2 = vadd.f32 %v651_v56, %v251_v48  ;;  %v554_v17 = vadd.f32 %v553_v6, %v552_v59  ;;  %v504_v24 = vadd.f32 %v503_v12, %v502_v1  ;;  %v149_v48 = vld [vmem:[%s2620_s0 + $0x3a0] sm:$0xff]  ;;  %v261_v49 = vadd.f32 %v260_v36, %v53_v27 }
  0x5b   :  { %v604_v7 = vadd.f32 %v603_v60, %v602_v51  ;;  %v312_v50 = vadd.f32 %v311_v37, %v73_v28  ;;  %v1894_v56 = vsel %vm262_vm0, %v141_v35, 0.0  ;;  %v105_v59 = vld [vmem:[%s2620_s0 + $0x240] sm:$0xff]  ;;  %v466_v6 = vadd.f32 %v149_v48, %v145_v47 }
  0x5c   :  { %v654_v13 = vadd.f32 %v653_v52, %v652_v2  ;;  %v555_v31 = vrot.slane %v554_v17, 1  ;;  %v864_v39 = vsel %vm846_vm4, %v504_v24, %v863_v26  ;;  %v81_v52 = vld [vmem:[%s2620_s0 + $0x180] sm:$0xff]  ;;  %v264_v62 = vadd.f32 %v263_v10, %v261_v49 }
  0x5d   :  { %v605_v18 = vrot.slane %v604_v7, 2  ;;  %v129_v60 = vld [vmem:[%s2620_s0 + $0x300] sm:$0xff]  ;;  %v313_v63 = vadd.f32 %v312_v50, %v77_v40  ;;  %v467_v20 = vadd.f32 %v466_v6, %v153_v61 }
  0x5e   :  { %v655_v25 = vrot.slane %v654_v13, 4  ;;  %v556_v44 = vadd.f32 %v555_v31, %v554_v17  ;;  %v173_v1 = vld [vmem:[%s2620_s0 + $0x460] sm:$0xff]  ;;  %v265_v11 = vrot.slane %v264_v62, 4  ;;  %v416_v19 = vadd.f32 %v415_v5, %v129_v60 }
  0x5f   :  { %v606_v32 = vadd.f32 %v605_v18, %v604_v7  ;;  %v177_v2 = vld [vmem:[%s2620_s0 + $0x480] sm:$0xff]  ;;  %v314_v12 = vadd.f32 %v313_v63, %v81_v52  ;;  %v365_v18 = vadd.f32 %v364_v4, %v105_v59 }
  0x60   :  { %v656_v38 = vadd.f32 %v655_v25, %v654_v13  ;;  %v865_v58 = vsel %vm848_vm5, %v556_v44, %v864_v39  ;;  %v197_v3 = vld [vmem:[%s2620_s0 + $0x520] sm:$0x1]  ;;  %v471_v13 = vsel %vm262_vm0, %v169_v53, 0.0  ;;  %v266_v23 = vadd.f32 %v265_v11, %v264_v62 }
  0x61   :  { %v607_v45 = vrot.slane %v606_v32, 1  ;;  %v109_v8 = vld [vmem:[%s2620_s0 + $0x260] sm:$0xff]  ;;  %v316_v24 = vadd.f32 %v315_v30, %v314_v12  ;;  %v518_v25 = vadd.f32 %v177_v2, %v173_v1  ;;  %v523_v26 = vsel %vm262_vm0, %v197_v3, 0.0 }
  0x62   :  { %v657_v51 = vrot.slane %v656_v38, 2  ;;  %v133_v9 = vld [vmem:[%s2620_s0 + $0x320] sm:$0xff]  ;;  %v366_v31 = vadd.f32 %v365_v18, %v109_v8  ;;  %v267_v35 = vrot.slane %v266_v23, 2 }
  0x63   :  { %v608_v57 = vadd.f32 %v607_v45, %v606_v32  ;;  %v157_v10 = vld [vmem:[%s2620_s0 + $0x3e0] sm:$0xff]  ;;  %v417_v32 = vadd.f32 %v416_v19, %v133_v9  ;;  %v317_v36 = vrot.slane %v316_v24, 4 }
  0x64   :  { %v658_v0 = vadd.f32 %v657_v51, %v656_v38  ;;  %v181_v15 = vld [vmem:[%s2620_s0 + $0x4a0] sm:$0xff]  ;;  %v468_v33 = vadd.f32 %v467_v20, %v157_v10  ;;  %v368_v42 = vadd.f32 %v1876_v43, %v366_v31  ;;  %v268_v48 = vadd.f32 %v267_v35, %v266_v23  ;;  %v60_v35 = vld [vmem:[%s2620_s0 + $0xd8] sm:$0x1] }
  0x65   :  { %v866_v7 = vsel %vm850_vm6, %v608_v57, %v865_v58  ;;  %v201_v16 = vld [vmem:[%s2620_s0 + $0x540] sm:$0xff]  ;;  %v519_v37 = vadd.f32 %v518_v25, %v181_v15  ;;  %v318_v49 = vadd.f32 %v317_v36, %v316_v24  ;;  %v44_v24 = vld [vmem:[%s2620_s0 + $0x58] sm:$0xff] }
  0x66   :  { %v659_v14 = vrot.slane %v658_v0, 1  ;;  %v205_v17 = vld [vmem:[%s2620_s0 + $0x560] sm:$0xff]  ;;  %v369_v53 = vrot.slane %v368_v42, 4  ;;  %v269_v59 = vrot.slane %v268_v48, 1 }
  0x67   :  { %v137_v21 = vld [vmem:[%s2620_s0 + $0x340] sm:$0xff]  ;;  %v570_v38 = vadd.f32 %v205_v17, %v201_v16  ;;  %v319_v60 = vrot.slane %v318_v49, 2 }
  0x68   :  { %v161_v22 = vld [vmem:[%s2620_s0 + $0x400] sm:$0xff]  ;;  %v660_v27 = vadd.f32 %v659_v14, %v658_v0  ;;  %v418_v44 = vadd.f32 %v417_v32, %v137_v21  ;;  %v270_v5 = vadd.f32 %v269_v59, %v268_v48  ;;  %v36_v14 = vld [vmem:[%s2620_s0 + $0x18] sm:$0xff] }
  0x69   :  { %v185_v28 = vld [vmem:[%s2620_s0 + $0x4c0] sm:$0xff]  ;;  %v469_v45 = vadd.f32 %v468_v33, %v161_v22  ;;  %v320_v6 = vadd.f32 %v319_v60, %v318_v49  ;;  %v68_v48 = vld [vmem:[%s2620_s0 + $0x118] sm:$0xff] }
  0x6a   :  { %v209_v29 = vld [vmem:[%s2620_s0 + $0x580] sm:$0xff]  ;;  %v1955_v39 = vsel %vm852_vm7, %v660_v27, %v866_v7  ;;  %v520_v50 = vadd.f32 %v519_v37, %v185_v28  ;;  %v420_v54 = vadd.f32 %v1894_v56, %v418_v44  ;;  %v370_v56 = vadd.f32 %v369_v53, %v368_v42  ;;  %v72_v59 = vld [vmem:[%s2620_s0 + $0x138] sm:$0xff] }
  0x6b   :  { %v165_v34 = vld [vmem:[%s2620_s0 + $0x420] sm:$0xff]  ;;  %935 = vmatmul.f32.vlgmr.msra.gmra.mxu2 %v1955_v39  ;;  %v571_v51 = vadd.f32 %v570_v38, %v209_v29  ;;  %v321_v16 = vrot.slane %v320_v6, 1 }
  0x6c   :  { %v225_v30 = vld [vmem:[%s2620_s0 + $0x600] sm:$0x1]  ;;  %v470_v55 = vadd.f32 %v469_v45, %v165_v34  ;;  %v421_v1 = vrot.slane %v420_v54, 4  ;;  %v371_v9 = vrot.slane %v370_v56, 2 }
  0x6d   :  { %v189_v40 = vld [vmem:[%s2620_s0 + $0x4e0] sm:$0xff]  ;;  %v575_v57 = vsel %vm262_vm0, %v225_v30, 0.0  ;;  %v322_v27 = vadd.f32 %v321_v16, %v320_v6  ;;  %v48_v30 = vld [vmem:[%s2620_s0 + $0x78] sm:$0xff] }
  0x6e   :  { %v213_v41 = vld [vmem:[%s2620_s0 + $0x5a0] sm:$0xff]  ;;  %v521_v61 = vadd.f32 %v520_v50, %v189_v40  ;;  %v472_v2 = vadd.f32 %v471_v13, %v470_v55  ;;  %v422_v10 = vadd.f32 %v421_v1, %v420_v54  ;;  %v40_v13 = vld [vmem:[%s2620_s0 + $0x38] sm:$0xff]  ;;  %v372_v20 = vadd.f32 %v371_v9, %v370_v56 }
  0x6f   :  { %v229_v46 = vld [vmem:[%s2620_s0 + $0x620] sm:$0xff]  ;;  %v572_v62 = vadd.f32 %v571_v51, %v213_v41  ;;  %v297_v31 = vadd.f32 %v40_v13, %v36_v14  ;;  %v841_v38 = vsel %vm840_vm1, %v322_v27, %v270_v5  ;;  %v88_v51 = vld [vmem:[%s2620_s0 + $0x1b8] sm:$0x1] }
  0x70   :  { %v233_v47 = vld [vmem:[%s2620_s0 + $0x640] sm:$0xff]  ;;  %v473_v11 = vrot.slane %v472_v2, 4  ;;  %v423_v21 = vrot.slane %v422_v10, 2  ;;  %v76_v5 = vld [vmem:[%s2620_s0 + $0x158] sm:$0xff] }
  0x71   :  { %v193_v43 = vld [vmem:[%s2620_s0 + $0x500] sm:$0xff]  ;;  %v622_v3 = vadd.f32 %v233_v47, %v229_v46  ;;  %v298_v40 = vadd.f32 %v297_v31, %v44_v24  ;;  %v52_v46 = vld [vmem:[%s2620_s0 + $0x98] sm:$0xff] }
  0x72   :  { %v217_v52 = vld [vmem:[%s2620_s0 + $0x5c0] sm:$0xff]  ;;  %v522_v7 = vadd.f32 %v521_v61, %v193_v43  ;;  %v474_v22 = vadd.f32 %v473_v11, %v472_v2  ;;  %v424_v32 = vadd.f32 %v423_v21, %v422_v10  ;;  %v64_v47 = vld [vmem:[%s2620_s0 + $0xf8] sm:$0xff] }
  0x73   :  { %v237_v58 = vld [vmem:[%s2620_s0 + $0x660] sm:$0xff]  ;;  %v573_v8 = vadd.f32 %v572_v62, %v217_v52  ;;  %v299_v43 = vadd.f32 %v298_v40, %v48_v30  ;;  %v302_v52 = vsel %vm262_vm0, %v60_v35, 0.0  ;;  %v92_v62 = vld [vmem:[%s2620_s0 + $0x1d8] sm:$0xff]  ;;  %v349_v1 = vadd.f32 %v68_v48, %v64_v47 }
  0x74   :  { %v221_v63 = vld [vmem:[%s2620_s0 + $0x5e0] sm:$0xff]  ;;  %v623_v12 = vadd.f32 %v622_v3, %v237_v58  ;;  %v524_v17 = vadd.f32 %v523_v26, %v522_v7  ;;  %v373_v26 = vrot.slane %v372_v20, 1  ;;  %v475_v33 = vrot.slane %v474_v22, 2  ;;  %v56_v58 = vld [vmem:[%s2620_s0 + $0xb8] sm:$0xff] }
  0x75   :  { %v253_v0 = vld [vmem:[%s2620_s0 + $0x6e0] sm:$0x1]  ;;  %v574_v18 = vadd.f32 %v573_v8, %v221_v63  ;;  %v425_v42 = vrot.slane %v424_v32, 1  ;;  %v96_v63 = vld [vmem:[%s2620_s0 + $0x1f8] sm:$0xff]  ;;  %v300_v56 = vadd.f32 %v299_v43, %v52_v46  ;;  %v354_v7 = vsel %vm262_vm0, %v88_v51, 0.0 }
  0x76   :  { %v241_v4 = vld [vmem:[%s2620_s0 + $0x680] sm:$0xff]  ;;  %v627_v19 = vsel %vm262_vm0, %v253_v0, 0.0  ;;  %v525_v28 = vrot.slane %v524_v17, 4  ;;  %v374_v41 = vadd.f32 %v373_v26, %v372_v20  ;;  %v476_v44 = vadd.f32 %v475_v33, %v474_v22  ;;  %v116_v0 = vld [vmem:[%s2620_s0 + $0x298] sm:$0x1] }
  0x77   :  { %v245_v15 = vld [vmem:[%s2620_s0 + $0x6a0] sm:$0xff]  ;;  %v624_v23 = vadd.f32 %v623_v12, %v241_v4  ;;  %v576_v29 = vadd.f32 %v575_v57, %v574_v18  ;;  %v426_v53 = vadd.f32 %v425_v42, %v424_v32  ;;  %v100_v6 = vld [vmem:[%s2620_s0 + $0x218] sm:$0xff]  ;;  %v301_v14 = vadd.f32 %v300_v56, %v56_v58 }
  0x78   :  { %v249_v25 = vld [vmem:[%s2620_s0 + $0x6c0] sm:$0xff]  ;;  %v526_v36 = vadd.f32 %v525_v28, %v524_v17  ;;  %v477_v54 = vrot.slane %v476_v44, 1  ;;  %v843_v57 = vsel %vm842_vm2, %v374_v41, %v841_v38  ;;  %v120_v10 = vld [vmem:[%s2620_s0 + $0x2b8] sm:$0xff]  ;;  %v350_v13 = vadd.f32 %v349_v1, %v72_v59 }
  0x79   :  { %v625_v34 = vadd.f32 %v624_v23, %v245_v15  ;;  %v577_v37 = vrot.slane %v576_v29, 4  ;;  %v845_v4 = vsel %vm844_vm3, %v426_v53, %v843_v57  ;;  %v124_v11 = vld [vmem:[%s2620_s0 + $0x2d8] sm:$0xff]  ;;  %v2068_v20 = vsel %vm262_vm0, %v116_v0, 0.0 }
  0x7a   :  { %v527_v49 = vrot.slane %v526_v36, 2  ;;  %v478_v2 = vadd.f32 %v477_v54, %v476_v44  ;;  %v144_v12 = vld [vmem:[%s2620_s0 + $0x378] sm:$0x1]  ;;  %v303_v27 = vadd.f32 %v302_v52, %v301_v14  ;;  %v351_v28 = vadd.f32 %v350_v13, %v76_v5 }
  0x7b   :  { %v626_v45 = vadd.f32 %v625_v34, %v249_v25  ;;  %v578_v50 = vadd.f32 %v577_v37, %v576_v29  ;;  %v80_v17 = vld [vmem:[%s2620_s0 + $0x178] sm:$0xff]  ;;  %v453_v34 = vadd.f32 %v124_v11, %v120_v10  ;;  %v2089_v30 = vsel %vm262_vm0, %v144_v12, 0.0 }
  0x7c   :  { %v528_v60 = vadd.f32 %v527_v49, %v526_v36  ;;  %v847_v16 = vsel %vm846_vm4, %v478_v2, %v845_v4  ;;  %v104_v18 = vld [vmem:[%s2620_s0 + $0x238] sm:$0xff]  ;;  %v304_v42 = vrot.slane %v303_v27, 4  ;;  %v352_v44 = vadd.f32 %v351_v28, %v80_v17 }
  0x7d   :  { %v628_v55 = vadd.f32 %v627_v19, %v626_v45  ;;  %v579_v61 = vrot.slane %v578_v50, 2  ;;  %v401_v19 = vadd.f32 %v96_v63, %v92_v62  ;;  %v128_v23 = vld [vmem:[%s2620_s0 + $0x2f8] sm:$0xff] }
  0x7e   :  { %v529_v8 = vrot.slane %v528_v60, 1  ;;  %v148_v24 = vld [vmem:[%s2620_s0 + $0x398] sm:$0xff] }
  0x7f   :  { %v629_v3 = vrot.slane %v628_v55, 4  ;;  %v580_v9 = vadd.f32 %v579_v61, %v578_v50  ;;  %v152_v25 = vld [vmem:[%s2620_s0 + $0x3b8] sm:$0xff]  ;;  %v402_v33 = vadd.f32 %v401_v19, %v100_v6  ;;  %v454_v50 = vadd.f32 %v453_v34, %v128_v23  ;;  %v715_v6 = vld [vmem:[%s2621_s1 + $0x148] sm:$0xff] }
  0x80   :  { %v530_v21 = vadd.f32 %v529_v8, %v528_v60  ;;  %v84_v31 = vld [vmem:[%s2620_s0 + $0x198] sm:$0xff]  ;;  %v505_v51 = vadd.f32 %v152_v25, %v148_v24  ;;  %v743_v8 = vld [vmem:[%s2621_s1 + $0x228] sm:$0xff]  ;;  %990 = vmatpush.msrb.mxu1 %v715_v6 }
  0x81   :  { %v630_v15 = vadd.f32 %v629_v3, %v628_v55  ;;  %v581_v22 = vrot.slane %v580_v9, 1  ;;  %v108_v26 = vld [vmem:[%s2620_s0 + $0x258] sm:$0xff]  ;;  %v403_v49 = vadd.f32 %v402_v33, %v104_v18  ;;  %v305_v55 = vadd.f32 %v304_v42, %v303_v27  ;;  %1012 = vmatpush.msrb.mxu2 %v743_v8 }
  0x82   :  { %v172_v32 = vld [vmem:[%s2620_s0 + $0x458] sm:$0x1]  ;;  %v849_v36 = vsel %vm848_vm5, %v530_v21, %v847_v16  ;;  %v353_v57 = vadd.f32 %v352_v44, %v84_v31 }
  0x83   :  { %v631_v29 = vrot.slane %v630_v15, 2  ;;  %v582_v35 = vadd.f32 %v581_v22, %v580_v9  ;;  %v112_v37 = vld [vmem:[%s2620_s0 + $0x278] sm:$0xff]  ;;  %v510_v58 = vsel %vm262_vm0, %v172_v32, 0.0  ;;  %v404_v63 = vadd.f32 %v403_v49, %v108_v26 }
  0x84   :  { %v132_v38 = vld [vmem:[%s2620_s0 + $0x318] sm:$0xff]  ;;  %v306_v1 = vrot.slane %v305_v55, 2  ;;  %v355_v2 = vadd.f32 %v354_v7, %v353_v57 }
  0x85   :  { %v136_v40 = vld [vmem:[%s2620_s0 + $0x338] sm:$0xff]  ;;  %v632_v45 = vadd.f32 %v631_v29, %v630_v15  ;;  %v851_v43 = vsel %vm850_vm6, %v582_v35, %v849_v36  ;;  %v455_v0 = vadd.f32 %v454_v50, %v132_v38  ;;  %v405_v11 = vadd.f32 %v404_v63, %v112_v37 }
  0x86   :  { %v156_v41 = vld [vmem:[%s2620_s0 + $0x3d8] sm:$0xff]  ;;  %v307_v17 = vadd.f32 %v306_v1, %v305_v55  ;;  %v356_v18 = vrot.slane %v355_v2, 4 }
  0x87   :  { %v176_v46 = vld [vmem:[%s2620_s0 + $0x478] sm:$0xff]  ;;  %v633_v59 = vrot.slane %v632_v45, 1  ;;  %v506_v56 = vadd.f32 %v505_v51, %v156_v41  ;;  %v456_v12 = vadd.f32 %v455_v0, %v136_v40  ;;  %v407_v25 = vadd.f32 %v2068_v20, %v405_v11 }
  0x88   :  { %v180_v47 = vld [vmem:[%s2620_s0 + $0x498] sm:$0xff]  ;;  %v308_v26 = vrot.slane %v307_v17, 1  ;;  %v357_v32 = vadd.f32 %v356_v18, %v355_v2 }
  0x89   :  { %v200_v48 = vld [vmem:[%s2620_s0 + $0x538] sm:$0x1]  ;;  %v557_v3 = vadd.f32 %v180_v47, %v176_v46  ;;  %v634_v9 = vadd.f32 %v633_v59, %v632_v45  ;;  %v408_v37 = vrot.slane %v407_v25, 4 }
  0x8a   :  { %v140_v52 = vld [vmem:[%s2620_s0 + $0x358] sm:$0xff]  ;;  %v2134_v4 = vsel %vm262_vm0, %v200_v48, 0.0  ;;  %v309_v44 = vadd.f32 %v308_v26, %v307_v17  ;;  %v358_v45 = vrot.slane %v357_v32, 2 }
  0x8b   :  { %v160_v53 = vld [vmem:[%s2620_s0 + $0x3f8] sm:$0xff]  ;;  %v2161_v22 = vsel %vm852_vm7, %v634_v9, %v851_v43  ;;  %v457_v27 = vadd.f32 %v456_v12, %v140_v52  ;;  %v409_v49 = vadd.f32 %v408_v37, %v407_v25  ;;  %v38_v52 = vld [vmem:[%s2620_s0 + $0x28] sm:$0xff] }
  0x8c   :  { %v164_v54 = vld [vmem:[%s2620_s0 + $0x418] sm:$0xff]  ;;  %v507_v14 = vadd.f32 %v506_v56, %v160_v53  ;;  %895 = vmatmul.f32.vlgmr.msra.gmra.mxu0 %v2161_v22 }
  0x8d   :  { %v184_v60 = vld [vmem:[%s2620_s0 + $0x4b8] sm:$0xff]  ;;  %v459_v38 = vadd.f32 %v2089_v30, %v457_v27  ;;  %v34_v30 = vld [vmem:[%s2620_s0 + $0x8] sm:$0xff] }
  0x8e   :  { %v204_v61 = vld [vmem:[%s2620_s0 + $0x558] sm:$0xff]  ;;  %v558_v19 = vadd.f32 %v557_v3, %v184_v60  ;;  %v508_v28 = vadd.f32 %v507_v14, %v164_v54  ;;  %v359_v54 = vadd.f32 %v358_v45, %v357_v32  ;;  %v410_v60 = vrot.slane %v409_v49, 2 }
  0x8f   :  { %v208_v62 = vld [vmem:[%s2620_s0 + $0x578] sm:$0xff]  ;;  %v460_v50 = vrot.slane %v459_v38, 4  ;;  %v271_v3 = vadd.f32 %v38_v52, %v34_v30 }
  0x90   :  { %v681_v5 = vld [vmem:[%s2621_s1 + $0x38] sm:$0xff]  ;;  %v609_v21 = vadd.f32 %v208_v62, %v204_v61  ;;  %v360_v56 = vrot.slane %v359_v54, 1 }
  0x91   :  { %v188_v7 = vld [vmem:[%s2620_s0 + $0x4d8] sm:$0xff]  ;;  %971 = vmatpush.msrb.mxu0 %v681_v5  ;;  %v461_v61 = vadd.f32 %v460_v50, %v459_v38 }
  0x92   :  { %v212_v10 = vld [vmem:[%s2620_s0 + $0x598] sm:$0xff]  ;;  %v559_v33 = vadd.f32 %v558_v19, %v188_v7 }
  0x93   :  { %v777_v13 = vld [vmem:[%s2621_s1 + $0x338] sm:$0xff]  ;;  %v610_v34 = vadd.f32 %v609_v21, %v212_v10 }
  0x94   :  { %v168_v15 = vld [vmem:[%s2620_s0 + $0x438] sm:$0xff]  ;;  %1031 = vmatpush.msrb.mxu3 %v777_v13 }
  0x95   :  { %v228_v16 = vld [vmem:[%s2620_s0 + $0x618] sm:$0x1]  ;;  %v509_v40 = vadd.f32 %v508_v28, %v168_v15 }
  0x96   :  { %v192_v23 = vld [vmem:[%s2620_s0 + $0x4f8] sm:$0xff]  ;;  %v614_v41 = vsel %vm262_vm0, %v228_v16, 0.0 }
  0x97   :  { %v216_v24 = vld [vmem:[%s2620_s0 + $0x5b8] sm:$0xff]  ;;  %v560_v46 = vadd.f32 %v559_v33, %v192_v23  ;;  %v511_v51 = vadd.f32 %v510_v58, %v509_v40  ;;  %v42_v58 = vld [vmem:[%s2620_s0 + $0x48] sm:$0xff] }
  0x98   :  { %v232_v29 = vld [vmem:[%s2620_s0 + $0x638] sm:$0xff]  ;;  %v611_v47 = vadd.f32 %v610_v34, %v216_v24 }
  0x99   :  { %v236_v31 = vld [vmem:[%s2620_s0 + $0x658] sm:$0xff]  ;;  %v512_v62 = vrot.slane %v511_v51, 4 }
  0x9a   :  { %v196_v20 = vld [vmem:[%s2620_s0 + $0x518] sm:$0xff]  ;;  %v661_v43 = vadd.f32 %v236_v31, %v232_v29 }
  0x9b   :  { %v220_v35 = vld [vmem:[%s2620_s0 + $0x5d8] sm:$0xff]  ;;  %v561_v55 = vadd.f32 %v560_v46, %v196_v20 }
  0x9c   :  { %v256_v36 = vld [vmem:[%s2620_s0 + $0x6f8] sm:$0x1]  ;;  %v612_v57 = vadd.f32 %v611_v47, %v220_v35 }
  0x9d   :  { %v240_v42 = vld [vmem:[%s2620_s0 + $0x678] sm:$0xff]  ;;  %v666_v59 = vsel %vm262_vm0, %v256_v36, 0.0  ;;  %v563_v1 = vadd.f32 %v2134_v4, %v561_v55 }
  0x9e   :  { %v224_v48 = vld [vmem:[%s2620_s0 + $0x5f8] sm:$0xff]  ;;  %v662_v63 = vadd.f32 %v661_v43, %v240_v42 }
  0x9f   :  { %v244_v53 = vld [vmem:[%s2620_s0 + $0x698] sm:$0xff]  ;;  %v613_v2 = vadd.f32 %v612_v57, %v224_v48 }
  0xa0   :  { %v248_v0 = vld [vmem:[%s2620_s0 + $0x6b8] sm:$0xff] }
  0xa1   :  { %14 = vsyncpa [#allocation3], 0  ;;  %v411_v5 = vadd.f32 %v410_v60, %v409_v49  ;;  %v462_v6 = vrot.slane %v461_v61, 2  ;;  %v513_v8 = vadd.f32 %v512_v62, %v511_v51  ;;  %v663_v9 = vadd.f32 %v662_v63, %v244_v53  ;;  %v46_v7 = vld [vmem:[%s2620_s0 + $0x68] sm:$0xff]  ;;  %v252_v10 = vld [vmem:[%s2620_s0 + $0x6d8] sm:$0xff]  ;;  %s1243_s18 = smov [#allocation2]  }
  0xa2   :  { %v361_v11 = vadd.f32 %v360_v56, %v359_v54  ;;  %v564_v12 = vrot.slane %v563_v1, 4  ;;  %v615_v14 = vadd.f32 %v614_v41, %v613_v2  ;;  %v272_v13 = vadd.f32 %v271_v3, %v42_v58  ;;  %v50_v18 = vld [vmem:[%s2620_s0 + $0x88] sm:$0xff]  ;;  %s1201_s19 = sshll.u32 %s1243_s18, 4  ;;  %s1202_s19 = int_to_ptr.vmem [resolvable:$true] %s1201_s19 }
  0xa3   :  { %v412_v4 = vrot.slane %v411_v5, 1  ;;  %v463_v15 = vadd.f32 %v462_v6, %v461_v61  ;;  %v514_v16 = vrot.slane %v513_v8, 2  ;;  %v664_v17 = vadd.f32 %v663_v9, %v248_v0  ;;  %v58_v19 = vld [vmem:[%s2620_s0 + $0xc8] sm:$0x1] }
  0xa4   :  { %v565_v21 = vadd.f32 %v564_v12, %v563_v1  ;;  %v616_v23 = vrot.slane %v615_v14, 4  ;;  %v868_v24 = vsel %vm840_vm1, %v361_v11, %v309_v44  ;;  %v273_v25 = vadd.f32 %v272_v13, %v46_v7  ;;  %v54_v26 = vld [vmem:[%s2620_s0 + $0xa8] sm:$0xff] }
  0xa5   :  { %v413_v27 = vadd.f32 %v412_v4, %v411_v5  ;;  %v464_v28 = vrot.slane %v463_v15, 1  ;;  %v515_v29 = vadd.f32 %v514_v16, %v513_v8  ;;  %v665_v31 = vadd.f32 %v664_v17, %v252_v10  ;;  %v62_v32 = vld [vmem:[%s2620_s0 + $0xe8] sm:$0xff] }
  0xa6   :  { %v66_v33 = vld [vmem:[%s2620_s0 + $0x108] sm:$0xff]  ;;  %v566_v34 = vrot.slane %v565_v21, 2  ;;  %v617_v20 = vadd.f32 %v616_v23, %v615_v14  ;;  %v274_v35 = vadd.f32 %v273_v25, %v50_v18  ;;  %v276_v36 = vsel %vm262_vm0, %v58_v19, 0.0 }
  0xa7   :  { %v465_v37 = vadd.f32 %v464_v28, %v463_v15  ;;  %v516_v38 = vrot.slane %v515_v29, 1  ;;  %v667_v40 = vadd.f32 %v666_v59, %v665_v31  ;;  %v869_v41 = vsel %vm842_vm2, %v413_v27, %v868_v24  ;;  %v70_v42 = vld [vmem:[%s2620_s0 + $0x128] sm:$0xff] }
  0xa8   :  { %v567_v44 = vadd.f32 %v566_v34, %v565_v21  ;;  %v618_v45 = vrot.slane %v617_v20, 2  ;;  %v90_v46 = vld [vmem:[%s2620_s0 + $0x1c8] sm:$0xff]  ;;  %v275_v48 = vadd.f32 %v274_v35, %v54_v26  ;;  %v323_v49 = vadd.f32 %v66_v33, %v62_v32 }
  0xa9   :  { %v94_v47 = vld [vmem:[%s2620_s0 + $0x1e8] sm:$0xff]  ;;  %v517_v50 = vadd.f32 %v516_v38, %v515_v29  ;;  %v668_v51 = vrot.slane %v667_v40, 4  ;;  %v870_v43 = vsel %vm844_vm3, %v465_v37, %v869_v41  ;;  %vm1171_vm8 = vcmask 523264  }
  0xaa   :  { %v74_v30 = vld [vmem:[%s2620_s0 + $0x148] sm:$0xff]  ;;  %v568_v53 = vrot.slane %v567_v44, 1  ;;  %v619_v54 = vadd.f32 %v618_v45, %v617_v20  ;;  %v277_v58 = vadd.f32 %v276_v36, %v275_v48  ;;  %v324_v60 = vadd.f32 %v323_v49, %v70_v42 }
  0xab   :  { %v86_v52 = vld [vmem:[%s2620_s0 + $0x1a8] sm:$0x1]  ;;  %v669_v61 = vadd.f32 %v668_v51, %v667_v40  ;;  %v871_v62 = vsel %vm846_vm4, %v517_v50, %v870_v43  ;;  %v375_v1 = vadd.f32 %v94_v47, %v90_v46  ;;  %v713_v51 = vld [vmem:[%s2621_s1 + $0x138] sm:$0xff] }
  0xac   :  { %v98_v55 = vld [vmem:[%s2620_s0 + $0x208] sm:$0xff]  ;;  %v569_v2 = vadd.f32 %v568_v53, %v567_v44  ;;  %v620_v3 = vrot.slane %v619_v54, 1  ;;  %v278_v9 = vrot.slane %v277_v58, 4  ;;  %v325_v7 = vadd.f32 %v324_v60, %v74_v30  ;;  %v741_v43 = vld [vmem:[%s2621_s1 + $0x218] sm:$0xff]  ;;  %991 = vmatpush.msrb.mxu1 %v713_v51 }
  0xad   :  { %v118_v57 = vld [vmem:[%s2620_s0 + $0x2a8] sm:$0xff]  ;;  %v670_v10 = vrot.slane %v669_v61, 2  ;;  %v328_v13 = vsel %vm262_vm0, %v86_v52, 0.0  ;;  %v376_v4 = vadd.f32 %v375_v1, %v98_v55  ;;  %1013 = vmatpush.msrb.mxu2 %v741_v43 }
  0xae   :  { %v122_v59 = vld [vmem:[%s2620_s0 + $0x2c8] sm:$0xff]  ;;  %v621_v16 = vadd.f32 %v620_v3, %v619_v54  ;;  %v872_v17 = vsel %vm848_vm5, %v569_v2, %v871_v62  ;;  %v279_v24 = vadd.f32 %v278_v9, %v277_v58 }
  0xaf   :  { %v78_v63 = vld [vmem:[%s2620_s0 + $0x168] sm:$0xff]  ;;  %v427_v15 = vadd.f32 %v122_v59, %v118_v57  ;;  %v671_v27 = vadd.f32 %v670_v10, %v669_v61  ;;  %v677_v59 = vld [vmem:[%s2621_s1 + $0x18] sm:$0xff] }
  0xb0   :  { %v82_v0 = vld [vmem:[%s2620_s0 + $0x188] sm:$0xff]  ;;  %v326_v25 = vadd.f32 %v325_v7, %v78_v63  ;;  %v873_v34 = vsel %vm850_vm6, %v621_v16, %v872_v17  ;;  %v280_v40 = vrot.slane %v279_v24, 2  ;;  %v773_v7 = vld [vmem:[%s2621_s1 + $0x318] sm:$0xff] }
  0xb1   :  { %v102_v56 = vld [vmem:[%s2620_s0 + $0x228] sm:$0xff]  ;;  %v672_v44 = vrot.slane %v671_v27, 1 }
  0xb2   :  { %v126_v5 = vld [vmem:[%s2620_s0 + $0x2e8] sm:$0xff]  ;;  %v377_v26 = vadd.f32 %v376_v4, %v102_v56  ;;  %v327_v41 = vadd.f32 %v326_v25, %v82_v0  ;;  %v281_v52 = vadd.f32 %v280_v40, %v279_v24 }
  0xb3   :  { %v146_v6 = vld [vmem:[%s2620_s0 + $0x388] sm:$0xff]  ;;  %v428_v32 = vadd.f32 %v427_v15, %v126_v5  ;;  %v673_v60 = vadd.f32 %v672_v44, %v671_v27 }
  0xb4   :  { %v150_v8 = vld [vmem:[%s2620_s0 + $0x3a8] sm:$0xff]  ;;  %v329_v53 = vadd.f32 %v328_v13, %v327_v41  ;;  %v282_v3 = vrot.slane %v281_v52, 1 }
  0xb5   :  { %v106_v11 = vld [vmem:[%s2620_s0 + $0x248] sm:$0xff]  ;;  %v479_v33 = vadd.f32 %v150_v8, %v146_v6  ;;  %v2375_v10 = vsel %vm852_vm7, %v673_v60, %v873_v34 }
  0xb6   :  { %v114_v12 = vld [vmem:[%s2620_s0 + $0x288] sm:$0x1]  ;;  %v378_v47 = vadd.f32 %v377_v26, %v106_v11  ;;  %v330_v5 = vrot.slane %v329_v53, 4  ;;  %955 = vmatmul.f32.vlgmr.msra.gmra.mxu3 %v2375_v10  ;;  %v283_v40 = vadd.f32 %v282_v3, %v281_v52 }
  0xb7   :  { %v130_v14 = vld [vmem:[%s2620_s0 + $0x308] sm:$0xff]  ;;  %v380_v42 = vsel %vm262_vm0, %v114_v12, 0.0 }
  0xb8   :  { %v110_v18 = vld [vmem:[%s2620_s0 + $0x268] sm:$0xff]  ;;  %v429_v48 = vadd.f32 %v428_v32, %v130_v14  ;;  %v331_v16 = vadd.f32 %v330_v5, %v329_v53 }
  0xb9   :  { %v134_v19 = vld [vmem:[%s2620_s0 + $0x328] sm:$0xff]  ;;  %v379_v0 = vadd.f32 %v378_v47, %v110_v18 }
  0xba   :  { %v142_v21 = vld [vmem:[%s2620_s0 + $0x368] sm:$0x1]  ;;  %v430_v56 = vadd.f32 %v429_v48, %v134_v19 }
  0xbb   :  { %v154_v23 = vld [vmem:[%s2620_s0 + $0x3c8] sm:$0xff]  ;;  %v432_v54 = vsel %vm262_vm0, %v142_v21, 0.0  ;;  %v381_v14 = vadd.f32 %v380_v42, %v379_v0  ;;  %v709_v21 = vld [vmem:[%s2621_s1 + $0x118] sm:$0xff] }
  0xbc   :  { %v158_v28 = vld [vmem:[%s2620_s0 + $0x3e8] sm:$0xff]  ;;  %v480_v49 = vadd.f32 %v479_v33, %v154_v23  ;;  %v332_v33 = vrot.slane %v331_v16, 2 }
  0xbd   :  { %v174_v29 = vld [vmem:[%s2620_s0 + $0x468] sm:$0xff] }
  0xbe   :  { %v178_v31 = vld [vmem:[%s2620_s0 + $0x488] sm:$0xff]  ;;  %v481_v1 = vadd.f32 %v480_v49, %v158_v28  ;;  %v382_v28 = vrot.slane %v381_v14, 4  ;;  %v1055_v49 = vld [vmem:[%s2623_s3 + $0x70] sm:$0xff] }
  0xbf   :  { %v138_v20 = vld [vmem:[%s2620_s0 + $0x348] sm:$0xff]  ;;  %v531_v55 = vadd.f32 %v178_v31, %v174_v29 }
  0xc0   :  { %v162_v35 = vld [vmem:[%s2620_s0 + $0x408] sm:$0xff]  ;;  %v431_v13 = vadd.f32 %v430_v56, %v138_v20  ;;  %v383_v41 = vadd.f32 %v382_v28, %v381_v14  ;;  %v1052_v14 = vld [vmem:[%s2623_s3 + $0x58] sm:$0xff] }
  0xc1   :  { %v182_v36 = vld [vmem:[%s2620_s0 + $0x4a8] sm:$0xff]  ;;  %v482_v4 = vadd.f32 %v481_v1, %v162_v35 }
  0xc2   :  { %v202_v37 = vld [vmem:[%s2620_s0 + $0x548] sm:$0xff]  ;;  %v532_v6 = vadd.f32 %v531_v55, %v182_v36  ;;  %v433_v29 = vadd.f32 %v432_v54, %v431_v13  ;;  %v384_v51 = vrot.slane %v383_v41, 2 }
  0xc3   :  { %v206_v38 = vld [vmem:[%s2620_s0 + $0x568] sm:$0xff] }
  0xc4   :  { %v170_v45 = vld [vmem:[%s2620_s0 + $0x448] sm:$0x1]  ;;  %v583_v8 = vadd.f32 %v206_v38, %v202_v37  ;;  %v434_v42 = vrot.slane %v433_v29, 4  ;;  %v385_v60 = vadd.f32 %v384_v51, %v383_v41  ;;  %v1069_v51 = vld [vmem:[%s2623_s3 + $0xe0] sm:$0xff] }
  0xc5   :  { %v186_v46 = vld [vmem:[%s2620_s0 + $0x4c8] sm:$0xff]  ;;  %v484_v17 = vsel %vm262_vm0, %v170_v45, 0.0  ;;  %v333_v45 = vadd.f32 %v332_v33, %v331_v16 }
  0xc6   :  { %v679_v50 = vld [vmem:[%s2621_s1 + $0x28] sm:$0xff]  ;;  %v533_v18 = vadd.f32 %v532_v6, %v186_v46  ;;  %v435_v43 = vadd.f32 %v434_v42, %v433_v29  ;;  %v386_v3 = vrot.slane %v385_v60, 1 }
  0xc7   :  { %v166_v30 = vld [vmem:[%s2620_s0 + $0x428] sm:$0xff]  ;;  %972 = vmatpush.msrb.mxu0 %v679_v50 }
  0xc8   :  { %v775_v57 = vld [vmem:[%s2621_s1 + $0x328] sm:$0xff]  ;;  %v483_v31 = vadd.f32 %v482_v4, %v166_v30 }
  0xc9   :  { %v711_v58 = vld [vmem:[%s2621_s1 + $0x128] sm:$0xff]  ;;  %1032 = vmatpush.msrb.mxu3 %v775_v57  ;;  %973 = vmatpush.msrb.mxu0 %v677_v59 }
  0xca   :  { %v190_v61 = vld [vmem:[%s2620_s0 + $0x4e8] sm:$0xff]  ;;  %992 = vmatpush.msrb.mxu1 %v711_v58  ;;  %v485_v44 = vadd.f32 %v484_v17, %v483_v31 }
  0xcb   :  { %v198_v62 = vld [vmem:[%s2620_s0 + $0x528] sm:$0x1]  ;;  %1033 = vmatpush.msrb.mxu3 %v773_v7  ;;  %v534_v34 = vadd.f32 %v533_v18, %v190_v61  ;;  %v436_v61 = vrot.slane %v435_v43, 2  ;;  %v1051_v18 = vld [vmem:[%s2623_s3 + $0x50] sm:$0xff] }
  0xcc   :  { %v210_v63 = vld [vmem:[%s2620_s0 + $0x588] sm:$0xff]  ;;  %v536_v26 = vsel %vm262_vm0, %v198_v62, 0.0  ;;  %993 = vmatpush.msrb.mxu1 %v709_v21  ;;  %v486_v30 = vrot.slane %v485_v44, 4 }
  0xcd   :  { %v214_v2 = vld [vmem:[%s2620_s0 + $0x5a8] sm:$0xff]  ;;  %v584_v19 = vadd.f32 %v583_v8, %v210_v63  ;;  %v437_v5 = vadd.f32 %v436_v61, %v435_v43  ;;  %v1068_v43 = vld [vmem:[%s2623_s3 + $0xd8] sm:$0xff] }
  0xce   :  { %v739_v9 = vld [vmem:[%s2621_s1 + $0x208] sm:$0xff]  ;;  %v487_v62 = vadd.f32 %v486_v30, %v485_v44  ;;  %v1047_v44 = vld [vmem:[%s2623_s3 + $0x30] sm:$0xff] }
  0xcf   :  { %v230_v11 = vld [vmem:[%s2620_s0 + $0x628] sm:$0xff]  ;;  %1014 = vmatpush.msrb.mxu2 %v739_v9  ;;  %v585_v20 = vadd.f32 %v584_v19, %v214_v2  ;;  %v1053_v2 = vld [vmem:[%s2623_s3 + $0x60] sm:$0xff]  ;;  %v438_v13 = vrot.slane %v437_v5, 1  ;;  %v1067_v30 = vld [vmem:[%s2623_s3 + $0xd0] sm:$0xff] }
  0xd0   :  { %v234_v12 = vld [vmem:[%s2620_s0 + $0x648] sm:$0xff]  ;;  %1015 = vmatmul.f32.vlgmr.msrb.gmra.mxu2 %v1955_v39  ;;  %v1056_v39 = vld [vmem:[%s2623_s3 + $0x78] sm:$0xff]  ;;  %v488_v6 = vrot.slane %v487_v62, 2 }
  0xd1   :  { %v675_v15 = vld [vmem:[%s2621_s1 + $0x8] sm:$0xff]  ;;  %v635_v35 = vadd.f32 %v234_v12, %v230_v11  ;;  %v439_v19 = vadd.f32 %v438_v13, %v437_v5  ;;  %v1132_v5 = vld [vmem:[%s2625_s5 + $0x70] sm:$0xff] }
  0xd2   :  { %v771_v23 = vld [vmem:[%s2621_s1 + $0x308] sm:$0xff]  ;;  %974 = vmatpush.msrb.mxu0 %v675_v15  ;;  %v489_v4 = vadd.f32 %v488_v6, %v487_v62  ;;  %v1041_v62 = vld [vmem:[%s2623_s3] sm:$0xff] }
  0xd3   :  { %v194_v24 = vld [vmem:[%s2620_s0 + $0x508] sm:$0xff]  ;;  %1034 = vmatpush.msrb.mxu3 %v771_v23  ;;  %975 = vmatmul.f32.vlgmr.msrb.gmra.mxu0 %v2161_v22  ;;  %v334_v22 = vrot.slane %v333_v45, 1 }
  0xd4   :  { %v218_v25 = vld [vmem:[%s2620_s0 + $0x5c8] sm:$0xff]  ;;  %v535_v46 = vadd.f32 %v534_v34, %v194_v24  ;;  %1077 = vmatpush.msra.mxu0 %v1056_v39  ;;  %1035 = vmatmul.f32.vlgmr.msrb.gmra.mxu3 %v2375_v10  ;;  %v387_v10 = vadd.f32 %v386_v3, %v385_v60  ;;  %v490_v21 = vrot.slane %v489_v4, 1  ;;  %v1049_v34 = vld [vmem:[%s2623_s3 + $0x40] sm:$0xff]  ;;  %v1133_v3 = vld [vmem:[%s2625_s5 + $0x78] sm:$0xff] }
  0xd5   :  { %v238_v27 = vld [vmem:[%s2620_s0 + $0x668] sm:$0xff]  ;;  %v586_v47 = vadd.f32 %v585_v20, %v218_v25  ;;  %v335_v63 = vadd.f32 %v334_v22, %v333_v45  ;;  %v1045_v22 = vld [vmem:[%s2623_s3 + $0x20] sm:$0xff]  ;;  %1138 = vmatpush.msra.mxu2 %v1133_v3 }
  0xd6   :  { %v226_v32 = vld [vmem:[%s2620_s0 + $0x608] sm:$0x1]  ;;  %v636_v48 = vadd.f32 %v635_v35, %v238_v27  ;;  %v537_v54 = vadd.f32 %v536_v26, %v535_v46  ;;  %1078 = vmatpush.msra.mxu0 %v1055_v49  ;;  %v491_v29 = vadd.f32 %v490_v21, %v489_v4  ;;  %v1071_v49 = vld [vmem:[%s2623_s3 + $0xf0] sm:$0xff]  ;;  %v1126_v4 = vld [vmem:[%s2625_s5 + $0x40] sm:$0xff] }
  0xd7   :  { %v707_v36 = vld [vmem:[%s2621_s1 + $0x108] sm:$0xff]  ;;  %v588_v52 = vsel %vm262_vm0, %v226_v32, 0.0  ;;  %v854_v12 = vsel %vm840_vm1, %v335_v63, %v283_v40  ;;  %v1061_v63 = vld [vmem:[%s2623_s3 + $0xa0] sm:$0xff]  ;;  %1139 = vmatpush.msra.mxu2 %v1132_v5 }
  0xd8   :  { %v222_v37 = vld [vmem:[%s2620_s0 + $0x5e8] sm:$0xff]  ;;  %994 = vmatpush.msrb.mxu1 %v707_v36  ;;  %v538_v0 = vrot.slane %v537_v54, 4  ;;  %v855_v23 = vsel %vm842_vm2, %v387_v10, %v854_v12 }
  0xd9   :  { %v242_v38 = vld [vmem:[%s2620_s0 + $0x688] sm:$0xff]  ;;  %v587_v55 = vadd.f32 %v586_v47, %v222_v37  ;;  %v856_v31 = vsel %vm844_vm3, %v439_v19, %v855_v23  ;;  %v1072_v47 = vld [vmem:[%s2623_s3 + $0xf8] sm:$0xff] }
  0xda   :  { %v246_v50 = vld [vmem:[%s2620_s0 + $0x6a8] sm:$0xff]  ;;  %v637_v57 = vadd.f32 %v636_v48, %v242_v38  ;;  %v539_v9 = vadd.f32 %v538_v0, %v537_v54  ;;  %v857_v20 = vsel %vm846_vm4, %v491_v29, %v856_v31  ;;  %v1048_v38 = vld [vmem:[%s2623_s3 + $0x38] sm:$0xff]  ;;  %v1065_v54 = vld [vmem:[%s2623_s3 + $0xc0] sm:$0xff] }
  0xdb   :  { %v254_v53 = vld [vmem:[%s2620_s0 + $0x6e8] sm:$0x1]  ;;  %v589_v56 = vadd.f32 %v588_v52, %v587_v55  ;;  %v1044_v55 = vld [vmem:[%s2623_s3 + $0x18] sm:$0xff] }
  0xdc   :  { %v1054_v59 = vld [vmem:[%s2623_s3 + $0x68] sm:$0xff]  ;;  %v638_v1 = vadd.f32 %v637_v57, %v246_v50  ;;  %v640_v8 = vsel %vm262_vm0, %v254_v53, 0.0  ;;  %v540_v15 = vrot.slane %v539_v9, 2  ;;  %v1064_v57 = vld [vmem:[%s2623_s3 + $0xb8] sm:$0xff] }
  0xdd   :  { %v250_v58 = vld [vmem:[%s2620_s0 + $0x6c8] sm:$0xff]  ;;  %1079 = vmatpush.msra.mxu0 %v1054_v59  ;;  %v590_v7 = vrot.slane %v589_v56, 4  ;;  %v1043_v59 = vld [vmem:[%s2623_s3 + $0x10] sm:$0xff]  ;;  %v1060_v0 = vld [vmem:[%s2623_s3 + $0x98] sm:$0xff] }
  0xde   :  { %v639_v11 = vadd.f32 %v638_v1, %v250_v58  ;;  %v541_v24 = vadd.f32 %v540_v15, %v539_v9  ;;  %v1050_v28 = vld [vmem:[%s2623_s3 + $0x48] sm:$0xff]  ;;  %v1063_v58 = vld [vmem:[%s2623_s3 + $0xb0] sm:$0xff]  ;;  %v802_v9 = vld [vmem:[%s2622_s2] sm:$0x3] }
  0xdf   :  { %1080 = vmatpush.msra.mxu0 %v1053_v2  ;;  %v591_v16 = vadd.f32 %v590_v7, %v589_v56  ;;  %v1070_v50 = vld [vmem:[%s2623_s3 + $0xe8] sm:$0xff]  ;;  %v1059_v56 = vld [vmem:[%s2623_s3 + $0x90] sm:$0xff]  ;;  %v1057_v2 = vld [vmem:[%s2623_s3 + $0x80] sm:$0xff]  ;;  %v804_v12 = vperm.slane %v802_v9, 0  ;;  %v805_v21 = vperm.slane %v802_v9, 1 }
  0xe0   :  { %v641_v17 = vadd.f32 %v640_v8, %v639_v11  ;;  %v542_v26 = vrot.slane %v541_v24, 1  ;;  %v1046_v52 = vld [vmem:[%s2623_s3 + $0x28] sm:$0xff]  ;;  %v1130_v8 = vld [vmem:[%s2625_s5 + $0x60] sm:$0xff]  ;;  %v1129_v7 = vld [vmem:[%s2625_s5 + $0x58] sm:$0xff] }
  0xe1   :  { %1081 = vmatpush.msra.mxu0 %v1052_v14  ;;  %v592_v25 = vrot.slane %v591_v16, 2  ;;  %v1066_v53 = vld [vmem:[%s2623_s3 + $0xc8] sm:$0xff]  ;;  %v1128_v14 = vld [vmem:[%s2625_s5 + $0x50] sm:$0xff] }
  0xe2   :  { %v642_v27 = vrot.slane %v641_v17, 4  ;;  %v543_v35 = vadd.f32 %v542_v26, %v541_v24  ;;  %v1042_v60 = vld [vmem:[%s2623_s3 + $0x8] sm:$0xff] }
  0xe3   :  { %1082 = vmatpush.msra.mxu0 %v1051_v18  ;;  %v593_v32 = vadd.f32 %v592_v25, %v591_v16  ;;  %v1062_v61 = vld [vmem:[%s2623_s3 + $0xa8] sm:$0xff]  ;;  %v1125_v16 = vld [vmem:[%s2625_s5 + $0x38] sm:$0xff] }
  0xe4   :  { %v643_v33 = vadd.f32 %v642_v27, %v641_v17  ;;  %v858_v42 = vsel %vm848_vm5, %v543_v35, %v857_v20  ;;  %v1058_v1 = vld [vmem:[%s2623_s3 + $0x88] sm:$0xff]  ;;  %v1124_v35 = vld [vmem:[%s2625_s5 + $0x30] sm:$0xff] }
  0xe5   :  { %1083 = vmatpush.msra.mxu0 %v1050_v28  ;;  %v594_v36 = vrot.slane %v593_v32, 1  ;;  %v1131_v6 = vld [vmem:[%s2625_s5 + $0x68] sm:$0xff] }
  0xe6   :  { %v644_v37 = vrot.slane %v643_v33, 2  ;;  %1140 = vmatpush.msra.mxu2 %v1131_v6  ;;  %v1127_v10 = vld [vmem:[%s2625_s5 + $0x48] sm:$0xff] }
  0xe7   :  { %1084 = vmatpush.msra.mxu0 %v1049_v34  ;;  %v595_v40 = vadd.f32 %v594_v36, %v593_v32  ;;  %v1123_v36 = vld [vmem:[%s2625_s5 + $0x28] sm:$0xff] }
  0xe8   :  { %v645_v41 = vadd.f32 %v644_v37, %v643_v33  ;;  %1141 = vmatpush.msra.mxu2 %v1130_v8  ;;  %v1122_v37 = vld [vmem:[%s2625_s5 + $0x20] sm:$0xff] }
  0xe9   :  { %1085 = vmatpush.msra.mxu0 %v1048_v38  ;;  %v859_v45 = vsel %vm850_vm6, %v595_v40, %v858_v42  ;;  %v1121_v38 = vld [vmem:[%s2625_s5 + $0x18] sm:$0xff]  ;;  %v1120_v40 = vld [vmem:[%s2625_s5 + $0x10] sm:$0xff]  ;;  %v1118_v42 = vld [vmem:[%s2625_s5] sm:$0xff] }
  0xea   :  { %v646_v39 = vrot.slane %v645_v41, 1  ;;  %1142 = vmatpush.msra.mxu2 %v1129_v7 }
  0xeb   :  { %1086 = vmatpush.msra.mxu0 %v1047_v44  ;;  %v1166_v44 = vld [vmem:[%s2627_s7 + $0x38] sm:$0xff] }
  0xec   :  { %v647_v46 = vadd.f32 %v646_v39, %v645_v41  ;;  %1143 = vmatpush.msra.mxu2 %v1128_v14  ;;  %v1119_v41 = vld [vmem:[%s2625_s5 + $0x8] sm:$0xff]  ;;  %v1165_v39 = vld [vmem:[%s2627_s7 + $0x30] sm:$0xff]  ;;  %1183 = vmatpush.msra.mxu3 %v1166_v44 }
  0xed   :  { %1087 = vmatpush.msra.mxu0 %v1046_v52  ;;  %v1161_v52 = vld [vmem:[%s2627_s7 + $0x10] sm:$0xff] }
  0xee   :  { %v860_v48 = vsel %vm852_vm7, %v647_v46, %v859_v45  ;;  %v936_v15 = vpop.f32.mrf.mxu2  ;;  %1144 = vmatpush.msra.mxu2 %v1127_v10  ;;  %v1164_v45 = vld [vmem:[%s2627_s7 + $0x28] sm:$0xff]  ;;  %1184 = vmatpush.msra.mxu3 %v1165_v39  ;;  %v1163_v46 = vld [vmem:[%s2627_s7 + $0x20] sm:$0xff] }
  0xef   :  { %915 = vmatmul.f32.vlgmr.msra.gmra.mxu1 %v860_v48  ;;  %1088 = vmatpush.msra.mxu0 %v1045_v22  ;;  %v1159_v22 = vld [vmem:[%s2627_s7] sm:$0xff] }
  0xf0   :  { %1097 = vmatpush.msra.mxu1 %v1072_v47  ;;  %1145 = vmatpush.msra.mxu2 %v1126_v4  ;;  %v1162_v47 = vld [vmem:[%s2627_s7 + $0x18] sm:$0xff] }
  0xf1   :  { %1089 = vmatpush.msra.mxu0 %v1044_v55  ;;  %1185 = vmatpush.msra.mxu3 %v1164_v45 }
  0xf2   :  { %1098 = vmatpush.msra.mxu1 %v1071_v49  ;;  %1146 = vmatpush.msra.mxu2 %v1125_v16 }
  0xf3   :  { %1090 = vmatpush.msra.mxu0 %v1043_v59  ;;  %1186 = vmatpush.msra.mxu3 %v1163_v46 }
  0xf4   :  { %1099 = vmatpush.msra.mxu1 %v1070_v50  ;;  %1147 = vmatpush.msra.mxu2 %v1124_v35 }
  0xf5   :  { %1091 = vmatpush.msra.mxu0 %v1042_v60  ;;  %1187 = vmatpush.msra.mxu3 %v1162_v47 }
  0xf6   :  { %1100 = vmatpush.msra.mxu1 %v1069_v51  ;;  %1148 = vmatpush.msra.mxu2 %v1123_v36 }
  0xf7   :  { %995 = vmatmul.f32.vlgmr.msrb.gmra.mxu1 %v860_v48  ;;  %1092 = vmatpush.msra.mxu0 %v1041_v62  ;;  %v1214_v48 = vld [vmem:[%s2624_s4] ss:$0 sm:$0xff] }
  0xf8   :  { %1101 = vmatpush.msra.mxu1 %v1068_v43  ;;  %1149 = vmatpush.msra.mxu2 %v1122_v37 }
  0xf9   :  { %1188 = vmatpush.msra.mxu3 %v1161_v52 }
  0xfa   :  { %1102 = vmatpush.msra.mxu1 %v1067_v30  ;;  %1150 = vmatpush.msra.mxu2 %v1121_v38 }
  0xfc   :  { %1103 = vmatpush.msra.mxu1 %v1066_v53  ;;  %1151 = vmatpush.msra.mxu2 %v1120_v40  ;;  %v1160_v53 = vld [vmem:[%s2627_s7 + $0x8] sm:$0xff]  ;;  %s1203_s7 = sshll.u32 %s2629_s9, 4  ;;  %s1204_s7 = int_to_ptr.hbm [resolvable:$true] %s1203_s7 }
  0xfd   :  { %1189 = vmatpush.msra.mxu3 %v1160_v53 }
  0xfe   :  { %1104 = vmatpush.msra.mxu1 %v1065_v54  ;;  %1152 = vmatpush.msra.mxu2 %v1119_v41  ;;  %v1215_v54 = vld [vmem:[%s2626_s6] ss:$0 sm:$0xff] }
  0xff   :  { %1190 = vmatpush.msra.mxu3 %v1159_v22 }
 0x100   :  { %1105 = vmatpush.msra.mxu1 %v1064_v57  ;;  %1153 = vmatpush.msra.mxu2 %v1118_v42 }
 0x102   :  { %1106 = vmatpush.msra.mxu1 %v1063_v58  ;;  %v1216_v58 = vld [vmem:[%s2628_s8] ss:$0 sm:$0xff] }
 0x104   :  { %1107 = vmatpush.msra.mxu1 %v1062_v61 }
 0x106   :  { %1108 = vmatpush.msra.mxu1 %v1061_v63 }
 0x108   :  { %1109 = vmatpush.msra.mxu1 %v1060_v0 }
 0x109   :  { %v896_v11 = vpop.f32.mrf.mxu0 }
 0x10a   :  { %1110 = vmatpush.msra.mxu1 %v1059_v56  ;;  %v897_v13 = vadd.f32 %v896_v11, %v804_v12 }
 0x10c   :  { %1111 = vmatpush.msra.mxu1 %v1058_v1 }
 0x10e   :  { %1112 = vmatpush.msra.mxu1 %v1057_v2 }
 0x139   :  { %v956_v18 = vpop.f32.mrf.mxu3 }
 0x150   :  { %v976_v23 = vpop.f32.mrf.mxu0 }
 0x151   :  { %v977_v27 = vadd.f32 %v976_v23, %v805_v21 }
 0x153   :  { %v1016_v31 = vpop.f32.mrf.mxu2 }
 0x157   :  { %v1036_v32 = vpop.f32.mrf.mxu3 }
 0x16c   :  { %v916_v17 = vpop.f32.mrf.mxu1 }
 0x16d   :  { %v917_v19 = vadd.f32 %v916_v17, %v897_v13 }
 0x16f   :  { %v937_v24 = vadd.f32 %v936_v15, %v917_v19 }
 0x171   :  { %v957_v25 = vadd.f32 %v956_v18, %v937_v24 }
 0x173   :  { %v1039_v28 = vmax.f32 %v957_v25, 0.0 }
 0x174   :  { %v996_v29 = vpop.f32.mrf.mxu1 }
 0x175   :  { %v997_v26 = vadd.f32 %v996_v29, %v977_v27  ;;  %1093 = vmatmul.f32.vlgmr.msra.gmra.mxu0 %v1039_v28 }
 0x177   :  { %v1017_v33 = vadd.f32 %v1016_v31, %v997_v26 }
 0x179   :  { %v1037_v34 = vadd.f32 %v1036_v32, %v1017_v33 }
 0x17b   :  { %v1040_v20 = vmax.f32 %v1037_v34, 0.0 }
 0x17d   :  { %1113 = vmatmul.f32.vlgmr.msra.gmra.mxu1 %v1040_v20 }
 0x1f2   :  { %v1094_v49 = vpop.f32.mrf.mxu0 }
 0x1f3   :  { %v1095_v50 = vadd.f32 %v1214_v48, %v1094_v49 }
 0x1fa   :  { %v1114_v51 = vpop.f32.mrf.mxu1 }
 0x1fb   :  { %v1115_v43 = vadd.f32 %v1114_v51, %v1095_v50 }
 0x1fd   :  { %v1117_v30 = vmax.f32 %v1115_v43, 0.0 }
 0x1ff   :  { %1154 = vmatmul.f32.vlgmr.msra.gmra.mxu2 %v1117_v30 }
 0x282   :  { %v1155_v55 = vpop.f32.mrf.mxu2 }
 0x283   :  { %v1156_v57 = vadd.f32 %v1215_v54, %v1155_v55 }
 0x285   :  { %v1158_v59 = vmax.f32 %v1156_v57, 0.0 }
 0x287   :  { %1212 = vmatmul.msk.f32.vlgmr.msra.gmra.mxu3 %vm1171_vm8, %v1158_v59 }
 0x30a   :  { %v1192_v60 = vpop.f32.mrf.mxu3 }
 0x30b   :  { %v1193_v61 = vadd.f32 %v1216_v58, %v1192_v60 }
 0x30d   :  { %1195 = vst [vmem:[#allocation2] sm:$0xff] %v1193_v61 }
 0x30e   :  { %1206 = dma.vmem_to_hbm [thread:$0]  %s1202_s19, 128, %s1204_s7, [#allocation3]  }
 0x30f   :  { %1241 = dma.done.wait [#allocation3], 128  }
 0x310   :  { %1242 = vsyncadd [#allocation3], 4294967168 }
 0x311   :  { %1211 = vsyncpa [#allocation3], 1 }

</bundles_post_ra>
